<compile_context>
chip_gen: v5e
topology: v5e:2x2
jax: 0.10.0
libtpu: 0.0.40
codegen_flags: <defaults>
</compile_context>

<pallas_src>
import functools

import jax
import jax.numpy as jnp
from jax import lax
from jax.experimental import pallas as pl
from jax.experimental.pallas import tpu as pltpu


# --------------------------------------------------------------------------- #
# Shared LSTM cell math (PyTorch gate order i, f, g, o); MXU in bf16, f32 acc.
# --------------------------------------------------------------------------- #
def _lstm_cell(x_bf16, h_f32, c_f32, wih_ref, whh_ref, b_ref, hidden):
    gates = (jnp.dot(x_bf16, wih_ref[...], preferred_element_type=jnp.float32)
             + jnp.dot(h_f32.astype(jnp.bfloat16), whh_ref[...],
                       preferred_element_type=jnp.float32)
             + b_ref[...])                                   # [B, 4H] f32
    i = jax.nn.sigmoid(gates[:, 0 * hidden:1 * hidden])
    f = jax.nn.sigmoid(gates[:, 1 * hidden:2 * hidden])
    g = jnp.tanh(gates[:, 2 * hidden:3 * hidden])
    o = jax.nn.sigmoid(gates[:, 3 * hidden:4 * hidden])
    c_new = f * c_f32 + i * g
    h_new = o * jnp.tanh(c_new)
    return h_new, c_new


# --------------------------------------------------------------------------- #
# Encoder: whole source sequence in one pallas_call, grid=(src_len,).
# --------------------------------------------------------------------------- #
def _encoder_kernel(xemb_ref, wih_ref, whh_ref, b_ref,
                    h_out_ref, c_out_ref, h_sc, c_sc, *, hidden):
    t = pl.program_id(0)

    @pl.when(t == 0)
    def _():
        h_sc[...] = jnp.zeros_like(h_sc)
        c_sc[...] = jnp.zeros_like(c_sc)

    h_new, c_new = _lstm_cell(xemb_ref[...], h_sc[...], c_sc[...],
                              wih_ref, whh_ref, b_ref, hidden)
    h_sc[...] = h_new
    c_sc[...] = c_new
    # constant out index_map -> HBM writeback only once, after the last step
    h_out_ref[...] = h_new
    c_out_ref[...] = c_new


def encoder_run(xemb, wih, whh, b):
    T, B, E = xemb.shape
    H = whh.shape[0]
    grid_spec = pltpu.PrefetchScalarGridSpec(
        num_scalar_prefetch=0,
        grid=(T,),
        in_specs=[
            pl.BlockSpec((None, B, E), lambda t: (t, 0, 0)),   # per-step embedding
            pl.BlockSpec(wih.shape, lambda t: (0, 0)),         # weights: resident
            pl.BlockSpec(whh.shape, lambda t: (0, 0)),
            pl.BlockSpec(b.shape, lambda t: (0, 0)),
        ],
        out_specs=[
            pl.BlockSpec((B, H), lambda t: (0, 0)),
            pl.BlockSpec((B, H), lambda t: (0, 0)),
        ],
        scratch_shapes=[pltpu.VMEM((B, H), jnp.float32),       # h carried in VMEM
                        pltpu.VMEM((B, H), jnp.float32)],      # c carried in VMEM
    )
    return pl.pallas_call(
        functools.partial(_encoder_kernel, hidden=H),
        grid_spec=grid_spec,
        out_shape=(jax.ShapeDtypeStruct((B, H), jnp.float32),
                   jax.ShapeDtypeStruct((B, H), jnp.float32)),
        compiler_params=pltpu.CompilerParams(dimension_semantics=("arbitrary",)),
    )(xemb, wih, whh, b)


# --------------------------------------------------------------------------- #
# Decoder: whole greedy rollout in one pallas_call, grid=(trg_len-1,).
# In-kernel: LSTM cell + vocab projection + argmax + one-hot embedding gather.
# --------------------------------------------------------------------------- #
def _decoder_kernel(x0_ref, h0_ref, c0_ref, emb_ref, wih_ref, whh_ref, b_ref,
                    wfc_ref, bfc_ref, logits_ref, h_sc, c_sc, x_sc, *, hidden):
    t = pl.program_id(0)

    @pl.when(t == 0)
    def _():
        h_sc[...] = h0_ref[...]
        c_sc[...] = c0_ref[...]
        x_sc[...] = x0_ref[...]

    h_new, c_new = _lstm_cell(x_sc[...], h_sc[...], c_sc[...],
                              wih_ref, whh_ref, b_ref, hidden)
    h_sc[...] = h_new
    c_sc[...] = c_new

    logits = (jnp.dot(h_new.astype(jnp.bfloat16), wfc_ref[...],
                      preferred_element_type=jnp.float32) + bfc_ref[...])   # [B, V]
    logits_ref[...] = logits

    # greedy argmax (first max index, matching argmax tie-break) -> one-hot
    vocab = logits.shape[1]
    col = lax.broadcasted_iota(jnp.int32, logits.shape, 1)
    m = jnp.max(logits, axis=1, keepdims=True)
    amax = jnp.min(jnp.where(logits == m, col, vocab), axis=1, keepdims=True)
    onehot = (col == amax).astype(jnp.bfloat16)                              # [B, V]
    # next-step input embedding: exact row select as one-hot @ emb (MXU)
    x_sc[...] = jnp.dot(onehot, emb_ref[...],
                        preferred_element_type=jnp.float32).astype(jnp.bfloat16)


def decoder_run(x0_emb, h0, c0, emb, wih, whh, b, wfc, bfc, *, steps):
    B, H = h0.shape
    E = emb.shape[1]
    V = wfc.shape[1]
    grid_spec = pltpu.PrefetchScalarGridSpec(
        num_scalar_prefetch=0,
        grid=(steps,),
        in_specs=[
            pl.BlockSpec((B, E), lambda t: (0, 0)),     # first decoder input emb
            pl.BlockSpec((B, H), lambda t: (0, 0)),     # h0 from encoder
            pl.BlockSpec((B, H), lambda t: (0, 0)),     # c0 from encoder
            pl.BlockSpec(emb.shape, lambda t: (0, 0)),  # decoder embedding table
            pl.BlockSpec(wih.shape, lambda t: (0, 0)),
            pl.BlockSpec(whh.shape, lambda t: (0, 0)),
            pl.BlockSpec(b.shape, lambda t: (0, 0)),
            pl.BlockSpec(wfc.shape, lambda t: (0, 0)),
            pl.BlockSpec(bfc.shape, lambda t: (0, 0)),
        ],
        out_specs=pl.BlockSpec((None, B, V), lambda t: (t, 0, 0)),  # lane-dense logits
        scratch_shapes=[pltpu.VMEM((B, H), jnp.float32),   # h
                        pltpu.VMEM((B, H), jnp.float32),   # c
                        pltpu.VMEM((B, E), jnp.bfloat16)], # next input embedding
    )
    return pl.pallas_call(
        functools.partial(_decoder_kernel, hidden=H),
        grid_spec=grid_spec,
        out_shape=jax.ShapeDtypeStruct((steps, B, V), jnp.float32),
        compiler_params=pltpu.CompilerParams(dimension_semantics=("arbitrary",)),
    )(x0_emb, h0, c0, emb, wih, whh, b, wfc, bfc)


# --------------------------------------------------------------------------- #
# Seq2Seq forward (mirrors the PyTorch module: outputs[0] stays zero)
# --------------------------------------------------------------------------- #
@jax.jit
def seq2seq_forward(params, x_tokens, target_tokens):
    trg_len = target_tokens.shape[0]
    B = x_tokens.shape[1]
    V = params["dec_fc_w"].shape[1]

    # Encoder token ids are known up front -> single plain-JAX gather (bf16 rows).
    enc_x = jnp.take(params["enc_emb"], x_tokens, axis=0)           # [T, B, E]
    h, c = encoder_run(enc_x, params["enc_wih"], params["enc_whh"], params["enc_b"])

    # First decoder input = target[0] (<sos> row).
    x0_emb = jnp.take(params["dec_emb"], target_tokens[0], axis=0)  # [B, E]

    logits_seq = decoder_run(x0_emb, h, c,
                             params["dec_emb"], params["dec_wih"],
                             params["dec_whh"], params["dec_b"],
                             params["dec_fc_w"], params["dec_fc_b"],
                             steps=trg_len - 1)                      # [T-1, B, V]

    # outputs[0] untouched (zeros), as in the PyTorch reference
    return jnp.concatenate([jnp.zeros((1, B, V), jnp.float32), logits_seq], axis=0)


# --------------------------------------------------------------------------- #
# Deterministic parameter init + demo
# --------------------------------------------------------------------------- #
def init_params(key, *, src_vocab, trg_vocab, emb_dim, hidden):
    ks = jax.random.split(key, 10)
    s = 0.1

    def wt(k, shape):  # bf16 weights (MXU operands / DMA halved); biases stay f32
        return (s * jax.random.normal(k, shape, jnp.float32)).astype(jnp.bfloat16)

    return {
        # encoder: Embedding(src_vocab, E) + LSTM(E, H)
        "enc_emb": wt(ks[0], (src_vocab, emb_dim)),
        "enc_wih": wt(ks[1], (emb_dim, 4 * hidden)),
        "enc_whh": wt(ks[2], (hidden, 4 * hidden)),
        "enc_b":   s * jax.random.normal(ks[3], (1, 4 * hidden), jnp.float32),
        # decoder: Embedding(trg_vocab, E) + LSTM(E, H) + Linear(H, trg_vocab)
        "dec_emb": wt(ks[4], (trg_vocab, emb_dim)),
        "dec_wih": wt(ks[5], (emb_dim, 4 * hidden)),
        "dec_whh": wt(ks[6], (hidden, 4 * hidden)),
        "dec_b":   s * jax.random.normal(ks[7], (1, 4 * hidden), jnp.float32),
        "dec_fc_w": wt(ks[8], (hidden, trg_vocab)),
        "dec_fc_b": s * jax.random.normal(ks[9], (1, trg_vocab), jnp.float32),
    }


if __name__ == "__main__":
    SRC_LEN, TRG_LEN, BATCH = 8, 8, 8        # batch = full sublane group
    EMB, HIDDEN = 128, 128                   # lane-aligned feature dims
    SRC_VOCAB, TRG_VOCAB = 128, 128          # lane-aligned vocab / logit dims

    key = jax.random.PRNGKey(0)
    k_par, k_x, k_t = jax.random.split(key, 3)

    params = init_params(k_par, src_vocab=SRC_VOCAB, trg_vocab=TRG_VOCAB,
                         emb_dim=EMB, hidden=HIDDEN)

    x_tokens = jax.random.randint(k_x, (SRC_LEN, BATCH), 0, SRC_VOCAB, dtype=jnp.int32)
    target_tokens = jax.random.randint(k_t, (TRG_LEN, BATCH), 0, TRG_VOCAB,
                                       dtype=jnp.int32)

    out = seq2seq_forward(params, x_tokens, target_tokens)
    out = jax.block_until_ready(out)

    assert out.shape == (TRG_LEN, BATCH, TRG_VOCAB), out.shape
    assert bool(jnp.all(out[0] == 0.0))      # outputs[0] untouched, as in PyTorch
    print("KERNEL_OK")
</pallas_src>

<mosaic_0001>
module attributes {stable_mosaic.version = 11 : i64} {
  func.func @_encoder_kernel(%arg0: i32, %arg1: memref<1x8x128xbf16, #tpu.memory_space<vmem>>, %arg2: memref<128x512xbf16, #tpu.memory_space<vmem>>, %arg3: memref<128x512xbf16, #tpu.memory_space<vmem>>, %arg4: memref<1x512xf32, #tpu.memory_space<vmem>>, %arg5: memref<8x128xf32, #tpu.memory_space<vmem>>, %arg6: memref<8x128xf32, #tpu.memory_space<vmem>>, %arg7: memref<8x128xf32, #tpu.memory_space<vmem>>, %arg8: memref<8x128xf32, #tpu.memory_space<vmem>>) attributes {dimension_semantics = [#tpu.dimension_semantics<arbitrary>], iteration_bounds = array<i64: 8>, scalar_prefetch = 0 : i64, scratch_operands = 2 : i64, tpu.core_type = #tpu.core_type<tc>, window_params = [{transform_indices = @transform_0, window_bounds = array<i64: 1, 8, 128>}, {pipeline_mode = #tpu.pipeline_mode<synchronous>, transform_indices = @transform_1, window_bounds = array<i64: 128, 512>}, {pipeline_mode = #tpu.pipeline_mode<synchronous>, transform_indices = @transform_2, window_bounds = array<i64: 128, 512>}, {pipeline_mode = #tpu.pipeline_mode<synchronous>, transform_indices = @transform_3, window_bounds = array<i64: 1, 512>}, {pipeline_mode = #tpu.pipeline_mode<synchronous>, transform_indices = @transform_4, window_bounds = array<i64: 8, 128>}, {pipeline_mode = #tpu.pipeline_mode<synchronous>, transform_indices = @transform_5, window_bounds = array<i64: 8, 128>}]} {
    %c0_i32 = arith.constant 0 : i32
    %0 = arith.cmpi eq, %arg0, %c0_i32 : i32
    %1 = arith.extui %0 : i1 to i32
    %c0_i32_0 = arith.constant 0 : i32
    %2 = arith.cmpi ne, %1, %c0_i32_0 : i32
    scf.if %2 {
      %cst_25 = arith.constant 0.000000e+00 : f32
      %45 = vector.broadcast %cst_25 : f32 to vector<8x128xf32>
      %c0_26 = arith.constant 0 : index
      %c0_27 = arith.constant 0 : index
      %46 = vector.load %arg7[%c0_26, %c0_27] : memref<8x128xf32, #tpu.memory_space<vmem>>, vector<8x128xf32>
      tpu.vector_store %arg7[%c0_26, %c0_27], %45 {strides = array<i32>} : memref<8x128xf32, #tpu.memory_space<vmem>>, vector<8x128xf32>,
      %cst_28 = arith.constant 0.000000e+00 : f32
      %47 = vector.broadcast %cst_28 : f32 to vector<8x128xf32>
      %c0_29 = arith.constant 0 : index
      %c0_30 = arith.constant 0 : index
      %48 = vector.load %arg8[%c0_29, %c0_30] : memref<8x128xf32, #tpu.memory_space<vmem>>, vector<8x128xf32>
      tpu.vector_store %arg8[%c0_29, %c0_30], %47 {strides = array<i32>} : memref<8x128xf32, #tpu.memory_space<vmem>>, vector<8x128xf32>,
    } else {
    }
    %c0 = arith.constant 0 : index
    %c0_1 = arith.constant 0 : index
    %c0_2 = arith.constant 0 : index
    %3 = vector.load %arg1[%c0, %c0_1, %c0_2] : memref<1x8x128xbf16, #tpu.memory_space<vmem>>, vector<1x8x128xbf16>
    %4 = vector.shape_cast %3 : vector<1x8x128xbf16> to vector<8x128xbf16>
    %c0_3 = arith.constant 0 : index
    %c0_4 = arith.constant 0 : index
    %5 = vector.load %arg7[%c0_3, %c0_4] : memref<8x128xf32, #tpu.memory_space<vmem>>, vector<8x128xf32>
    %c0_5 = arith.constant 0 : index
    %c0_6 = arith.constant 0 : index
    %6 = vector.load %arg8[%c0_5, %c0_6] : memref<8x128xf32, #tpu.memory_space<vmem>>, vector<8x128xf32>
    %c0_7 = arith.constant 0 : index
    %c0_8 = arith.constant 0 : index
    %7 = vector.load %arg2[%c0_7, %c0_8] : memref<128x512xbf16, #tpu.memory_space<vmem>>, vector<128x512xbf16>
    %cst = arith.constant dense<0.000000e+00> : vector<8x512xf32>
    %8 = tpu.matmul %4, %7, %cst {dimension_numbers = #tpu.dot_dimension_numbers<[1], [0], [0], [1], [0, 0, 1, 1], [], []>} : vector<8x128xbf16>, vector<128x512xbf16>, vector<8x512xf32> -> vector<8x512xf32>
    %9 = arith.truncf %5 : vector<8x128xf32> to vector<8x128xbf16>
    %c0_9 = arith.constant 0 : index
    %c0_10 = arith.constant 0 : index
    %10 = vector.load %arg3[%c0_9, %c0_10] : memref<128x512xbf16, #tpu.memory_space<vmem>>, vector<128x512xbf16>
    %cst_11 = arith.constant dense<0.000000e+00> : vector<8x512xf32>
    %11 = tpu.matmul %9, %10, %cst_11 {dimension_numbers = #tpu.dot_dimension_numbers<[1], [0], [0], [1], [0, 0, 1, 1], [], []>} : vector<8x128xbf16>, vector<128x512xbf16>, vector<8x512xf32> -> vector<8x512xf32>
    %12 = arith.addf %8, %11 : vector<8x512xf32>
    %c0_12 = arith.constant 0 : index
    %c0_13 = arith.constant 0 : index
    %13 = vector.load %arg4[%c0_12, %c0_13] : memref<1x512xf32, #tpu.memory_space<vmem>>, vector<1x512xf32>
    %14 = vector.broadcast %13 : vector<1x512xf32> to vector<8x512xf32>
    %15 = arith.addf %12, %14 : vector<8x512xf32>
    %16 = vector.extract_strided_slice %15 {offsets = [0, 0], sizes = [8, 128], strides = [1, 1]} : vector<8x512xf32> to vector<8x128xf32>
    %17 = arith.negf %16 : vector<8x128xf32>
    %18 = math.exp %17 : vector<8x128xf32>
    %cst_14 = arith.constant 1.000000e+00 : f32
    %19 = vector.broadcast %cst_14 : f32 to vector<8x128xf32>
    %20 = arith.addf %19, %18 : vector<8x128xf32>
    %21 = arith.divf %19, %20 : vector<8x128xf32>
    %22 = vector.extract_strided_slice %15 {offsets = [0, 128], sizes = [8, 128], strides = [1, 1]} : vector<8x512xf32> to vector<8x128xf32>
    %23 = arith.negf %22 : vector<8x128xf32>
    %24 = math.exp %23 : vector<8x128xf32>
    %cst_15 = arith.constant 1.000000e+00 : f32
    %25 = vector.broadcast %cst_15 : f32 to vector<8x128xf32>
    %26 = arith.addf %25, %24 : vector<8x128xf32>
    %27 = arith.divf %25, %26 : vector<8x128xf32>
    %28 = vector.extract_strided_slice %15 {offsets = [0, 256], sizes = [8, 128], strides = [1, 1]} : vector<8x512xf32> to vector<8x128xf32>
    %29 = math.tanh %28 : vector<8x128xf32>
    %30 = vector.extract_strided_slice %15 {offsets = [0, 384], sizes = [8, 128], strides = [1, 1]} : vector<8x512xf32> to vector<8x128xf32>
    %31 = arith.negf %30 : vector<8x128xf32>
    %32 = math.exp %31 : vector<8x128xf32>
    %cst_16 = arith.constant 1.000000e+00 : f32
    %33 = vector.broadcast %cst_16 : f32 to vector<8x128xf32>
    %34 = arith.addf %33, %32 : vector<8x128xf32>
    %35 = arith.divf %33, %34 : vector<8x128xf32>
    %36 = arith.mulf %27, %6 : vector<8x128xf32>
    %37 = arith.mulf %21, %29 : vector<8x128xf32>
    %38 = arith.addf %36, %37 : vector<8x128xf32>
    %39 = math.tanh %38 : vector<8x128xf32>
    %40 = arith.mulf %35, %39 : vector<8x128xf32>
    %c0_17 = arith.constant 0 : index
    %c0_18 = arith.constant 0 : index
    %41 = vector.load %arg7[%c0_17, %c0_18] : memref<8x128xf32, #tpu.memory_space<vmem>>, vector<8x128xf32>
    tpu.vector_store %arg7[%c0_17, %c0_18], %40 {strides = array<i32>} : memref<8x128xf32, #tpu.memory_space<vmem>>, vector<8x128xf32>,
    %c0_19 = arith.constant 0 : index
    %c0_20 = arith.constant 0 : index
    %42 = vector.load %arg8[%c0_19, %c0_20] : memref<8x128xf32, #tpu.memory_space<vmem>>, vector<8x128xf32>
    tpu.vector_store %arg8[%c0_19, %c0_20], %38 {strides = array<i32>} : memref<8x128xf32, #tpu.memory_space<vmem>>, vector<8x128xf32>,
    %c0_21 = arith.constant 0 : index
    %c0_22 = arith.constant 0 : index
    %43 = vector.load %arg5[%c0_21, %c0_22] : memref<8x128xf32, #tpu.memory_space<vmem>>, vector<8x128xf32>
    tpu.vector_store %arg5[%c0_21, %c0_22], %40 {strides = array<i32>} : memref<8x128xf32, #tpu.memory_space<vmem>>, vector<8x128xf32>,
    %c0_23 = arith.constant 0 : index
    %c0_24 = arith.constant 0 : index
    %44 = vector.load %arg6[%c0_23, %c0_24] : memref<8x128xf32, #tpu.memory_space<vmem>>, vector<8x128xf32>
    tpu.vector_store %arg6[%c0_23, %c0_24], %38 {strides = array<i32>} : memref<8x128xf32, #tpu.memory_space<vmem>>, vector<8x128xf32>,
    return
  }
  func.func @transform_0(%arg0: i32) -> (i32, i32, i32) {
    %c0_i32 = arith.constant 0 : i32
    %c0_i32_0 = arith.constant 0 : i32
    %c0_i32_1 = arith.constant 0 : i32
    return %arg0, %c0_i32, %c0_i32_0 : i32, i32, i32
  }
  func.func @transform_1(%arg0: i32) -> (i32, i32) {
    %c0_i32 = arith.constant 0 : i32
    %c0_i32_0 = arith.constant 0 : i32
    %c0_i32_1 = arith.constant 0 : i32
    return %c0_i32, %c0_i32_0 : i32, i32
  }
  func.func @transform_2(%arg0: i32) -> (i32, i32) {
    %c0_i32 = arith.constant 0 : i32
    %c0_i32_0 = arith.constant 0 : i32
    %c0_i32_1 = arith.constant 0 : i32
    return %c0_i32, %c0_i32_0 : i32, i32
  }
  func.func @transform_3(%arg0: i32) -> (i32, i32) {
    %c0_i32 = arith.constant 0 : i32
    %c0_i32_0 = arith.constant 0 : i32
    %c0_i32_1 = arith.constant 0 : i32
    return %c0_i32, %c0_i32_0 : i32, i32
  }
  func.func @transform_4(%arg0: i32) -> (i32, i32) {
    %c0_i32 = arith.constant 0 : i32
    %c0_i32_0 = arith.constant 0 : i32
    %c0_i32_1 = arith.constant 0 : i32
    return %c0_i32, %c0_i32_0 : i32, i32
  }
  func.func @transform_5(%arg0: i32) -> (i32, i32) {
    %c0_i32 = arith.constant 0 : i32
    %c0_i32_0 = arith.constant 0 : i32
    %c0_i32_1 = arith.constant 0 : i32
    return %c0_i32, %c0_i32_0 : i32, i32
  }
}

module attributes {stable_mosaic.version = 11 : i64} {
  func.func @_decoder_kernel(%arg0: i32, %arg1: memref<8x128xbf16, #tpu.memory_space<vmem>>, %arg2: memref<8x128xf32, #tpu.memory_space<vmem>>, %arg3: memref<8x128xf32, #tpu.memory_space<vmem>>, %arg4: memref<128x128xbf16, #tpu.memory_space<vmem>>, %arg5: memref<128x512xbf16, #tpu.memory_space<vmem>>, %arg6: memref<128x512xbf16, #tpu.memory_space<vmem>>, %arg7: memref<1x512xf32, #tpu.memory_space<vmem>>, %arg8: memref<128x128xbf16, #tpu.memory_space<vmem>>, %arg9: memref<1x128xf32, #tpu.memory_space<vmem>>, %arg10: memref<1x8x128xf32, #tpu.memory_space<vmem>>, %arg11: memref<8x128xf32, #tpu.memory_space<vmem>>, %arg12: memref<8x128xf32, #tpu.memory_space<vmem>>, %arg13: memref<8x128xbf16, #tpu.memory_space<vmem>>) attributes {dimension_semantics = [#tpu.dimension_semantics<arbitrary>], iteration_bounds = array<i64: 7>, scalar_prefetch = 0 : i64, scratch_operands = 3 : i64, tpu.core_type = #tpu.core_type<tc>, window_params = [{pipeline_mode = #tpu.pipeline_mode<synchronous>, transform_indices = @transform_0, window_bounds = array<i64: 8, 128>}, {pipeline_mode = #tpu.pipeline_mode<synchronous>, transform_indices = @transform_1, window_bounds = array<i64: 8, 128>}, {pipeline_mode = #tpu.pipeline_mode<synchronous>, transform_indices = @transform_2, window_bounds = array<i64: 8, 128>}, {pipeline_mode = #tpu.pipeline_mode<synchronous>, transform_indices = @transform_3, window_bounds = array<i64: 128, 128>}, {pipeline_mode = #tpu.pipeline_mode<synchronous>, transform_indices = @transform_4, window_bounds = array<i64: 128, 512>}, {pipeline_mode = #tpu.pipeline_mode<synchronous>, transform_indices = @transform_5, window_bounds = array<i64: 128, 512>}, {pipeline_mode = #tpu.pipeline_mode<synchronous>, transform_indices = @transform_6, window_bounds = array<i64: 1, 512>}, {pipeline_mode = #tpu.pipeline_mode<synchronous>, transform_indices = @transform_7, window_bounds = array<i64: 128, 128>}, {pipeline_mode = #tpu.pipeline_mode<synchronous>, transform_indices = @transform_8, window_bounds = array<i64: 1, 128>}, {transform_indices = @transform_9, window_bounds = array<i64: 1, 8, 128>}]} {
    %c0_i32 = arith.constant 0 : i32
    %0 = arith.cmpi eq, %arg0, %c0_i32 : i32
    %1 = arith.extui %0 : i1 to i32
    %c0_i32_0 = arith.constant 0 : i32
    %2 = arith.cmpi ne, %1, %c0_i32_0 : i32
    scf.if %2 {
      %c0_35 = arith.constant 0 : index
      %c0_36 = arith.constant 0 : index
      %69 = vector.load %arg2[%c0_35, %c0_36] : memref<8x128xf32, #tpu.memory_space<vmem>>, vector<8x128xf32>
      %c0_37 = arith.constant 0 : index
      %c0_38 = arith.constant 0 : index
      %70 = vector.load %arg11[%c0_37, %c0_38] : memref<8x128xf32, #tpu.memory_space<vmem>>, vector<8x128xf32>
      tpu.vector_store %arg11[%c0_37, %c0_38], %69 {strides = array<i32>} : memref<8x128xf32, #tpu.memory_space<vmem>>, vector<8x128xf32>,
      %c0_39 = arith.constant 0 : index
      %c0_40 = arith.constant 0 : index
      %71 = vector.load %arg3[%c0_39, %c0_40] : memref<8x128xf32, #tpu.memory_space<vmem>>, vector<8x128xf32>
      %c0_41 = arith.constant 0 : index
      %c0_42 = arith.constant 0 : index
      %72 = vector.load %arg12[%c0_41, %c0_42] : memref<8x128xf32, #tpu.memory_space<vmem>>, vector<8x128xf32>
      tpu.vector_store %arg12[%c0_41, %c0_42], %71 {strides = array<i32>} : memref<8x128xf32, #tpu.memory_space<vmem>>, vector<8x128xf32>,
      %c0_43 = arith.constant 0 : index
      %c0_44 = arith.constant 0 : index
      %73 = vector.load %arg1[%c0_43, %c0_44] : memref<8x128xbf16, #tpu.memory_space<vmem>>, vector<8x128xbf16>
      %c0_45 = arith.constant 0 : index
      %c0_46 = arith.constant 0 : index
      %74 = vector.load %arg13[%c0_45, %c0_46] : memref<8x128xbf16, #tpu.memory_space<vmem>>, vector<8x128xbf16>
      tpu.vector_store %arg13[%c0_45, %c0_46], %73 {strides = array<i32>} : memref<8x128xbf16, #tpu.memory_space<vmem>>, vector<8x128xbf16>,
    } else {
    }
    %c0 = arith.constant 0 : index
    %c0_1 = arith.constant 0 : index
    %3 = vector.load %arg13[%c0, %c0_1] : memref<8x128xbf16, #tpu.memory_space<vmem>>, vector<8x128xbf16>
    %c0_2 = arith.constant 0 : index
    %c0_3 = arith.constant 0 : index
    %4 = vector.load %arg11[%c0_2, %c0_3] : memref<8x128xf32, #tpu.memory_space<vmem>>, vector<8x128xf32>
    %c0_4 = arith.constant 0 : index
    %c0_5 = arith.constant 0 : index
    %5 = vector.load %arg12[%c0_4, %c0_5] : memref<8x128xf32, #tpu.memory_space<vmem>>, vector<8x128xf32>
    %c0_6 = arith.constant 0 : index
    %c0_7 = arith.constant 0 : index
    %6 = vector.load %arg5[%c0_6, %c0_7] : memref<128x512xbf16, #tpu.memory_space<vmem>>, vector<128x512xbf16>
    %cst = arith.constant dense<0.000000e+00> : vector<8x512xf32>
    %7 = tpu.matmul %3, %6, %cst {dimension_numbers = #tpu.dot_dimension_numbers<[1], [0], [0], [1], [0, 0, 1, 1], [], []>} : vector<8x128xbf16>, vector<128x512xbf16>, vector<8x512xf32> -> vector<8x512xf32>
    %8 = arith.truncf %4 : vector<8x128xf32> to vector<8x128xbf16>
    %c0_8 = arith.constant 0 : index
    %c0_9 = arith.constant 0 : index
    %9 = vector.load %arg6[%c0_8, %c0_9] : memref<128x512xbf16, #tpu.memory_space<vmem>>, vector<128x512xbf16>
    %cst_10 = arith.constant dense<0.000000e+00> : vector<8x512xf32>
    %10 = tpu.matmul %8, %9, %cst_10 {dimension_numbers = #tpu.dot_dimension_numbers<[1], [0], [0], [1], [0, 0, 1, 1], [], []>} : vector<8x128xbf16>, vector<128x512xbf16>, vector<8x512xf32> -> vector<8x512xf32>
    %11 = arith.addf %7, %10 : vector<8x512xf32>
    %c0_11 = arith.constant 0 : index
    %c0_12 = arith.constant 0 : index
    %12 = vector.load %arg7[%c0_11, %c0_12] : memref<1x512xf32, #tpu.memory_space<vmem>>, vector<1x512xf32>
    %13 = vector.broadcast %12 : vector<1x512xf32> to vector<8x512xf32>
    %14 = arith.addf %11, %13 : vector<8x512xf32>
    %15 = vector.extract_strided_slice %14 {offsets = [0, 0], sizes = [8, 128], strides = [1, 1]} : vector<8x512xf32> to vector<8x128xf32>
    %16 = arith.negf %15 : vector<8x128xf32>
    %17 = math.exp %16 : vector<8x128xf32>
    %cst_13 = arith.constant 1.000000e+00 : f32
    %18 = vector.broadcast %cst_13 : f32 to vector<8x128xf32>
    %19 = arith.addf %18, %17 : vector<8x128xf32>
    %20 = arith.divf %18, %19 : vector<8x128xf32>
    %21 = vector.extract_strided_slice %14 {offsets = [0, 128], sizes = [8, 128], strides = [1, 1]} : vector<8x512xf32> to vector<8x128xf32>
    %22 = arith.negf %21 : vector<8x128xf32>
    %23 = math.exp %22 : vector<8x128xf32>
    %cst_14 = arith.constant 1.000000e+00 : f32
    %24 = vector.broadcast %cst_14 : f32 to vector<8x128xf32>
    %25 = arith.addf %24, %23 : vector<8x128xf32>
    %26 = arith.divf %24, %25 : vector<8x128xf32>
    %27 = vector.extract_strided_slice %14 {offsets = [0, 256], sizes = [8, 128], strides = [1, 1]} : vector<8x512xf32> to vector<8x128xf32>
    %28 = math.tanh %27 : vector<8x128xf32>
    %29 = vector.extract_strided_slice %14 {offsets = [0, 384], sizes = [8, 128], strides = [1, 1]} : vector<8x512xf32> to vector<8x128xf32>
    %30 = arith.negf %29 : vector<8x128xf32>
    %31 = math.exp %30 : vector<8x128xf32>
    %cst_15 = arith.constant 1.000000e+00 : f32
    %32 = vector.broadcast %cst_15 : f32 to vector<8x128xf32>
    %33 = arith.addf %32, %31 : vector<8x128xf32>
    %34 = arith.divf %32, %33 : vector<8x128xf32>
    %35 = arith.mulf %26, %5 : vector<8x128xf32>
    %36 = arith.mulf %20, %28 : vector<8x128xf32>
    %37 = arith.addf %35, %36 : vector<8x128xf32>
    %38 = math.tanh %37 : vector<8x128xf32>
    %39 = arith.mulf %34, %38 : vector<8x128xf32>
    %c0_16 = arith.constant 0 : index
    %c0_17 = arith.constant 0 : index
    %40 = vector.load %arg11[%c0_16, %c0_17] : memref<8x128xf32, #tpu.memory_space<vmem>>, vector<8x128xf32>
    tpu.vector_store %arg11[%c0_16, %c0_17], %39 {strides = array<i32>} : memref<8x128xf32, #tpu.memory_space<vmem>>, vector<8x128xf32>,
    %c0_18 = arith.constant 0 : index
    %c0_19 = arith.constant 0 : index
    %41 = vector.load %arg12[%c0_18, %c0_19] : memref<8x128xf32, #tpu.memory_space<vmem>>, vector<8x128xf32>
    tpu.vector_store %arg12[%c0_18, %c0_19], %37 {strides = array<i32>} : memref<8x128xf32, #tpu.memory_space<vmem>>, vector<8x128xf32>,
    %42 = arith.truncf %39 : vector<8x128xf32> to vector<8x128xbf16>
    %c0_20 = arith.constant 0 : index
    %c0_21 = arith.constant 0 : index
    %43 = vector.load %arg8[%c0_20, %c0_21] : memref<128x128xbf16, #tpu.memory_space<vmem>>, vector<128x128xbf16>
    %cst_22 = arith.constant dense<0.000000e+00> : vector<8x128xf32>
    %44 = tpu.matmul %42, %43, %cst_22 {dimension_numbers = #tpu.dot_dimension_numbers<[1], [0], [0], [1], [0, 0, 1, 1], [], []>} : vector<8x128xbf16>, vector<128x128xbf16>, vector<8x128xf32> -> vector<8x128xf32>
    %c0_23 = arith.constant 0 : index
    %c0_24 = arith.constant 0 : index
    %45 = vector.load %arg9[%c0_23, %c0_24] : memref<1x128xf32, #tpu.memory_space<vmem>>, vector<1x128xf32>
    %46 = vector.broadcast %45 : vector<1x128xf32> to vector<8x128xf32>
    %47 = arith.addf %44, %46 : vector<8x128xf32>
    %c0_25 = arith.constant 0 : index
    %c0_26 = arith.constant 0 : index
    %c0_27 = arith.constant 0 : index
    %48 = vector.load %arg10[%c0_25, %c0_26, %c0_27] : memref<1x8x128xf32, #tpu.memory_space<vmem>>, vector<1x8x128xf32>
    %49 = vector.shape_cast %48 : vector<1x8x128xf32> to vector<8x128xf32>
    %50 = vector.shape_cast %47 : vector<8x128xf32> to vector<1x8x128xf32>
    tpu.vector_store %arg10[%c0_25, %c0_26, %c0_27], %50 {strides = array<i32>} : memref<1x8x128xf32, #tpu.memory_space<vmem>>, vector<1x8x128xf32>,
    %51 = tpu.iota {dimensions = array<i32: 1>} : vector<8x128xi32>
    %cst_28 = arith.constant dense<0xFF800000> : vector<8xf32>
    %52 = vector.multi_reduction <maximumf>, %47, %cst_28 [1] : vector<8x128xf32> to vector<8xf32>
    %53 = vector.shape_cast %52 : vector<8xf32> to vector<8x1xf32>
    %54 = vector.broadcast %53 : vector<8x1xf32> to vector<8x128xf32>
    %55 = arith.cmpf oeq, %47, %54 : vector<8x128xf32>
    %c128_i32 = arith.constant 128 : i32
    %56 = vector.broadcast %c128_i32 : i32 to vector<8x128xi32>
    %57 = arith.select %55, %51, %56 : vector<8x128xi1>, vector<8x128xi32>
    %cst_29 = arith.constant dense<2147483647> : vector<8xi32>
    %58 = vector.multi_reduction <minsi>, %57, %cst_29 [1] : vector<8x128xi32> to vector<8xi32>
    %59 = vector.shape_cast %58 : vector<8xi32> to vector<8x1xi32>
    %60 = vector.broadcast %59 : vector<8x1xi32> to vector<8x128xi32>
    %61 = arith.cmpi eq, %51, %60 : vector<8x128xi32>
    %62 = arith.extui %61 : vector<8x128xi1> to vector<8x128xi32>
    %63 = arith.sitofp %62 : vector<8x128xi32> to vector<8x128xf32>
    %64 = arith.truncf %63 : vector<8x128xf32> to vector<8x128xbf16>
    %c0_30 = arith.constant 0 : index
    %c0_31 = arith.constant 0 : index
    %65 = vector.load %arg4[%c0_30, %c0_31] : memref<128x128xbf16, #tpu.memory_space<vmem>>, vector<128x128xbf16>
    %cst_32 = arith.constant dense<0.000000e+00> : vector<8x128xf32>
    %66 = tpu.matmul %64, %65, %cst_32 {dimension_numbers = #tpu.dot_dimension_numbers<[1], [0], [0], [1], [0, 0, 1, 1], [], []>} : vector<8x128xbf16>, vector<128x128xbf16>, vector<8x128xf32> -> vector<8x128xf32>
    %67 = arith.truncf %66 : vector<8x128xf32> to vector<8x128xbf16>
    %c0_33 = arith.constant 0 : index
    %c0_34 = arith.constant 0 : index
    %68 = vector.load %arg13[%c0_33, %c0_34] : memref<8x128xbf16, #tpu.memory_space<vmem>>, vector<8x128xbf16>
    tpu.vector_store %arg13[%c0_33, %c0_34], %67 {strides = array<i32>} : memref<8x128xbf16, #tpu.memory_space<vmem>>, vector<8x128xbf16>,
    return
  }
  func.func @transform_0(%arg0: i32) -> (i32, i32) {
    %c0_i32 = arith.constant 0 : i32
    %c0_i32_0 = arith.constant 0 : i32
    %c0_i32_1 = arith.constant 0 : i32
    return %c0_i32, %c0_i32_0 : i32, i32
  }
  func.func @transform_1(%arg0: i32) -> (i32, i32) {
    %c0_i32 = arith.constant 0 : i32
    %c0_i32_0 = arith.constant 0 : i32
    %c0_i32_1 = arith.constant 0 : i32
    return %c0_i32, %c0_i32_0 : i32, i32
  }
  func.func @transform_2(%arg0: i32) -> (i32, i32) {
    %c0_i32 = arith.constant 0 : i32
    %c0_i32_0 = arith.constant 0 : i32
    %c0_i32_1 = arith.constant 0 : i32
    return %c0_i32, %c0_i32_0 : i32, i32
  }
  func.func @transform_3(%arg0: i32) -> (i32, i32) {
    %c0_i32 = arith.constant 0 : i32
    %c0_i32_0 = arith.constant 0 : i32
    %c0_i32_1 = arith.constant 0 : i32
    return %c0_i32, %c0_i32_0 : i32, i32
  }
  func.func @transform_4(%arg0: i32) -> (i32, i32) {
    %c0_i32 = arith.constant 0 : i32
    %c0_i32_0 = arith.constant 0 : i32
    %c0_i32_1 = arith.constant 0 : i32
    return %c0_i32, %c0_i32_0 : i32, i32
  }
  func.func @transform_5(%arg0: i32) -> (i32, i32) {
    %c0_i32 = arith.constant 0 : i32
    %c0_i32_0 = arith.constant 0 : i32
    %c0_i32_1 = arith.constant 0 : i32
    return %c0_i32, %c0_i32_0 : i32, i32
  }
  func.func @transform_6(%arg0: i32) -> (i32, i32) {
    %c0_i32 = arith.constant 0 : i32
    %c0_i32_0 = arith.constant 0 : i32
    %c0_i32_1 = arith.constant 0 : i32
    return %c0_i32, %c0_i32_0 : i32, i32
  }
  func.func @transform_7(%arg0: i32) -> (i32, i32) {
    %c0_i32 = arith.constant 0 : i32
    %c0_i32_0 = arith.constant 0 : i32
    %c0_i32_1 = arith.constant 0 : i32
    return %c0_i32, %c0_i32_0 : i32, i32
  }
  func.func @transform_8(%arg0: i32) -> (i32, i32) {
    %c0_i32 = arith.constant 0 : i32
    %c0_i32_0 = arith.constant 0 : i32
    %c0_i32_1 = arith.constant 0 : i32
    return %c0_i32, %c0_i32_0 : i32, i32
  }
  func.func @transform_9(%arg0: i32) -> (i32, i32, i32) {
    %c0_i32 = arith.constant 0 : i32
    %c0_i32_0 = arith.constant 0 : i32
    %c0_i32_1 = arith.constant 0 : i32
    return %arg0, %c0_i32, %c0_i32_0 : i32, i32, i32
  }
}

</mosaic_0001>

<bundles_post_ra>
// kernel: seq2seq_forward.3
= control target key start
LH: loop header
LB: loop body
LE: loop exit
PB: predicated region body
PF: predicated region fallthrough
CT: control target
= control target key end

     0   :  { %14 = vsyncpa [#allocation6], 0  ;;  %s1885_s0 = inlined_call_operand.vmem [shape: bf16[8,128], index: 0, kind: input, shape index: {}]   ;;  %s1886_s1 = inlined_call_operand.vmem [shape: f32[8,128], index: 1, kind: input, shape index: {}]   ;;  %s1887_s2 = inlined_call_operand.vmem [shape: f32[8,128], index: 2, kind: input, shape index: {}]   ;;  %s1888_s3 = inlined_call_operand.vmem [shape: bf16[128,128], index: 3, kind: input, shape index: {}]   ;;  %s1889_s4 = inlined_call_operand.hbm [shape: bf16[128,512], index: 4, kind: input, shape index: {}]   ;;  %s1890_s5 = inlined_call_operand.hbm [shape: bf16[128,512], index: 5, kind: input, shape index: {}]   ;;  %s1891_s6 = inlined_call_operand.vmem [shape: f32[1,512], index: 6, kind: input, shape index: {}]   ;;  %s1892_s7 = inlined_call_operand.vmem [shape: bf16[128,128], index: 7, kind: input, shape index: {}]   ;;  %s1893_s8 = inlined_call_operand.vmem [shape: f32[1,128], index: 8, kind: input, shape index: {}]   ;;  %s1894_s9 = inlined_call_operand.vmem [shape: f32[7,8,128], index: 9, kind: output, shape index: {}]  }
   0x1   :  { %15 = vsyncpa [#allocation8], 0  ;;  %s1773_s30 = smov 0  }
   0x2 LB: > { %s264_s12 = sshll.u32 %s1889_s4, 4  ;;  %s1782_s13 = sadd.s32 4294967295, %s1716_s30   ;;  %s1716_s30 = sphi %s1773_s30, %s21_s30   ;;  %s265_s12 = int_to_ptr.hbm [resolvable:$true] %s264_s12 }
   0x3   : > { %p1177_p0 = scmp.ge.s32.totalorder %s1716_s30, 1  ;;  %p241_p1 = scmp.lt.s32.totalorder %s1716_s30, 8 }
   0x4   : > { %p1178_p2 = scmp.ne.s32.totalorder %s1782_s13, 0  ;;  %p1608_p3 = scmp.eq.s32.totalorder %s1782_s13, 0 }
   0x5   : > { %p1788_p4 = pnand %p1177_p0, %p241_p1  ;;  %s1718_s15 = smov [#allocation5]  }
   0x6   : > { %s266_s16 = sshll.u32 %s1718_s15, 4  ;;  %s278_s19 = sshll.u32 %s1890_s5, 4  ;;  %s267_s16 = int_to_ptr.vmem [resolvable:$true] %s266_s16  ;;  %s279_s19 = int_to_ptr.hbm [resolvable:$true] %s278_s19 }
   0x7   : > { %p1601_p5 = pneg %p1788_p4  ;;  %s1719_s20 = smov [#allocation7]  }
   0x8   : > { %s280_s21 = sshll.u32 %s1719_s20, 4  ;;  %s1720_s22 = smov 256   ;;  %s281_s21 = int_to_ptr.vmem [resolvable:$true] %s280_s21 }
   0x9   : > { %p1602_p6 = pnand %p1608_p3, %p1601_p5  ;;  %s1721_s23 = smov 16  }
   0xa   : > { %305 = sbr.rel (%p1788_p4) target bundleno = 892 (0x37c), region = 56 }
   0xb   : > { %1604 = dma.hbm_to_vmem [thread:$0]  (!%p1602_p6), %s265_s12, 4096, %s267_s16, [#allocation6], %s1720_s22, %s1720_s22, %s1721_s23  }
   0xc   : > { %1607 = dma.hbm_to_vmem [thread:$0]  (!%p1602_p6), %s279_s19, 4096, %s281_s21, [#allocation8], %s1720_s22, %s1720_s22, %s1721_s23  }
   0xf   : > { %1707 = dma.done.wait (%p1608_p3), [#allocation6], 4096  }
  0x10   : > { %1709 = vsyncadd (%p1608_p3), [#allocation6], 4294963200 }
  0x11   : > { %1711 = dma.done.wait (%p1608_p3), [#allocation8], 4096  }
  0x12   : > { %1713 = vsyncadd (%p1608_p3), [#allocation8], 4294963200  ;;  %p341_p7 = scmp.lt.s32.totalorder %s1782_s13, 6 }
  0x13   : > { %348 = sbr.rel (%p1178_p2) target bundleno = 28 (0x1c), region = 68 }
  0x14   : > { %s342_s24 = scalar_select %p341_p7, %s1782_s13, 6 }
  0x16   : > { %s1183_s25 = sshll.u32 %s342_s24, 3 }
  0x17   : > { %s1814_s28 = scalar_lea.vmem %s1894_s9, %s1183_s25 }
  0x18   : > { %v349_v0 = vld [vmem:[%s1886_s1] sm:$0xff] }
  0x19   : > { %v351_v1 = vld [vmem:[%s1887_s2] sm:$0xff]  ;;  %350 = vst [vmem:[#allocation2] sm:$0xff] %v349_v0 }
  0x1a   : > { %v353_v2 = vld [vmem:[%s1885_s0] sm:$0xf]  ;;  %352 = vst [vmem:[#allocation3] sm:$0xff] %v351_v1 }
  0x1b   : > { %354 = vst [vmem:[#allocation4] sm:$0xf] %v353_v2 }
  0x1c PF: > { %v1299_v3 = vld [vmem:[#allocation7 + $0xe0] sm:$0xf]  ;;  %v1575_v4 = vld [vmem:[#allocation7 + $0xec] sm:$0xf0]  ;;  %v1573_v5 = vld [vmem:[#allocation7 + $0xe4] sm:$0xf] }
  0x1d   : > { %v1300_v6 = vor.u32 %v1575_v4, %v1299_v3  ;;  %v1301_v7 = vld [vmem:[#allocation7 + $0xf0] sm:$0xf0]  ;;  %v1307_v8 = vld [vmem:[#allocation7 + $0xe8] sm:$0xf]  ;;  %v1576_v9 = vld [vmem:[#allocation7 + $0xf4] sm:$0xf0] }
  0x1e   : > { %v1304_v10 = vor.u32 %v1573_v5, %v1301_v7  ;;  %v1308_v11 = vor.u32 %v1576_v9, %v1307_v8  ;;  %v1574_v12 = vld [vmem:[#allocation7 + $0xec] sm:$0xf]  ;;  %v1309_v13 = vld [vmem:[#allocation7 + $0xf8] sm:$0xf0]  ;;  %v1283_v14 = vld [vmem:[#allocation7 + $0xc0] sm:$0xf] }
  0x1f   : > { %583 = vmatpush.bf16.msra.mxu0 %v1300_v6  ;;  %v1312_v15 = vor.u32 %v1574_v12, %v1309_v13  ;;  %v1571_v16 = vld [vmem:[#allocation7 + $0xcc] sm:$0xf0]  ;;  %v1569_v17 = vld [vmem:[#allocation7 + $0xc4] sm:$0xf]  ;;  %v1285_v18 = vld [vmem:[#allocation7 + $0xd0] sm:$0xf0] }
  0x20   : > { %596 = vmatpush.bf16.msra.mxu1 %v1304_v10  ;;  %609 = vmatpush.bf16.msra.mxu2 %v1308_v11  ;;  %v1284_v19 = vor.u32 %v1571_v16, %v1283_v14  ;;  %v1288_v20 = vor.u32 %v1569_v17, %v1285_v18  ;;  %v1291_v21 = vld [vmem:[#allocation7 + $0xc8] sm:$0xf]  ;;  %v1572_v22 = vld [vmem:[#allocation7 + $0xd4] sm:$0xf0]  ;;  %v1570_v23 = vld [vmem:[#allocation7 + $0xcc] sm:$0xf] }
  0x21   : > { %622 = vmatpush.bf16.msra.mxu3 %v1312_v15  ;;  %v1292_v24 = vor.u32 %v1572_v22, %v1291_v21  ;;  %v1293_v25 = vld [vmem:[#allocation7 + $0xd8] sm:$0xf0]  ;;  %v1267_v26 = vld [vmem:[#allocation7 + $0xa0] sm:$0xf]  ;;  %v1567_v27 = vld [vmem:[#allocation7 + $0xac] sm:$0xf0] }
  0x22   : > { %v1296_v28 = vor.u32 %v1570_v23, %v1293_v25  ;;  %v1565_v29 = vld [vmem:[#allocation7 + $0xa4] sm:$0xf]  ;;  %v1269_v30 = vld [vmem:[#allocation7 + $0xb0] sm:$0xf0]  ;;  %v1275_v31 = vld [vmem:[#allocation7 + $0xa8] sm:$0xf]  ;;  %v1268_v32 = vor.u32 %v1567_v27, %v1267_v26 }
  0x23   : > { %584 = vmatpush.bf16.msra.mxu0 %v1284_v19  ;;  %v1568_v33 = vld [vmem:[#allocation7 + $0xb4] sm:$0xf0]  ;;  %v1566_v34 = vld [vmem:[#allocation7 + $0xac] sm:$0xf]  ;;  %v1277_v35 = vld [vmem:[#allocation7 + $0xb8] sm:$0xf0]  ;;  %v1272_v36 = vor.u32 %v1565_v29, %v1269_v30 }
  0x24   : > { %597 = vmatpush.bf16.msra.mxu1 %v1288_v20  ;;  %610 = vmatpush.bf16.msra.mxu2 %v1292_v24  ;;  %v1276_v37 = vor.u32 %v1568_v33, %v1275_v31  ;;  %v1251_v38 = vld [vmem:[#allocation7 + $0x80] sm:$0xf]  ;;  %v1563_v39 = vld [vmem:[#allocation7 + $0x8c] sm:$0xf0]  ;;  %v1561_v40 = vld [vmem:[#allocation7 + $0x84] sm:$0xf]  ;;  %v1280_v41 = vor.u32 %v1566_v34, %v1277_v35 }
  0x25   : > { %623 = vmatpush.bf16.msra.mxu3 %v1296_v28  ;;  %v1253_v42 = vld [vmem:[#allocation7 + $0x90] sm:$0xf0]  ;;  %v1259_v43 = vld [vmem:[#allocation7 + $0x88] sm:$0xf]  ;;  %v1564_v44 = vld [vmem:[#allocation7 + $0x94] sm:$0xf0]  ;;  %v1252_v47 = vor.u32 %v1563_v39, %v1251_v38 }
  0x26   : > { %v1562_v45 = vld [vmem:[#allocation7 + $0x8c] sm:$0xf]  ;;  %v1261_v46 = vld [vmem:[#allocation7 + $0x98] sm:$0xf0]  ;;  %v1256_v48 = vor.u32 %v1561_v40, %v1253_v42  ;;  %v1260_v49 = vor.u32 %v1564_v44, %v1259_v43  ;;  %v1235_v50 = vld [vmem:[#allocation7 + $0x60] sm:$0xf] }
  0x27   : > { %585 = vmatpush.bf16.msra.mxu0 %v1268_v32  ;;  %v1559_v51 = vld [vmem:[#allocation7 + $0x6c] sm:$0xf0]  ;;  %v1557_v52 = vld [vmem:[#allocation7 + $0x64] sm:$0xf]  ;;  %v1264_v53 = vor.u32 %v1562_v45, %v1261_v46  ;;  %v1237_v54 = vld [vmem:[#allocation7 + $0x70] sm:$0xf0] }
  0x28   : > { %598 = vmatpush.bf16.msra.mxu1 %v1272_v36  ;;  %611 = vmatpush.bf16.msra.mxu2 %v1276_v37  ;;  %v1243_v55 = vld [vmem:[#allocation7 + $0x68] sm:$0xf]  ;;  %v1560_v56 = vld [vmem:[#allocation7 + $0x74] sm:$0xf0]  ;;  %v1558_v57 = vld [vmem:[#allocation7 + $0x6c] sm:$0xf]  ;;  %v1236_v59 = vor.u32 %v1559_v51, %v1235_v50  ;;  %v1240_v60 = vor.u32 %v1557_v52, %v1237_v54 }
  0x29   : > { %624 = vmatpush.bf16.msra.mxu3 %v1280_v41  ;;  %v1245_v58 = vld [vmem:[#allocation7 + $0x78] sm:$0xf0]  ;;  %v1244_v61 = vor.u32 %v1560_v56, %v1243_v55  ;;  %v1219_v62 = vld [vmem:[#allocation7 + $0x40] sm:$0xf]  ;;  %v1555_v63 = vld [vmem:[#allocation7 + $0x4c] sm:$0xf0] }
  0x2a   : > { %v1553_v0 = vld [vmem:[#allocation7 + $0x44] sm:$0xf]  ;;  %v1248_v1 = vor.u32 %v1558_v57, %v1245_v58  ;;  %v1221_v2 = vld [vmem:[#allocation7 + $0x50] sm:$0xf0]  ;;  %v1227_v3 = vld [vmem:[#allocation7 + $0x48] sm:$0xf]  ;;  %v1220_v7 = vor.u32 %v1555_v63, %v1219_v62 }
  0x2b   : > { %586 = vmatpush.bf16.msra.mxu0 %v1252_v47  ;;  %v1556_v4 = vld [vmem:[#allocation7 + $0x54] sm:$0xf0]  ;;  %v1554_v5 = vld [vmem:[#allocation7 + $0x4c] sm:$0xf]  ;;  %v1229_v6 = vld [vmem:[#allocation7 + $0x58] sm:$0xf0]  ;;  %v1224_v8 = vor.u32 %v1553_v0, %v1221_v2 }
  0x2c   : > { %599 = vmatpush.bf16.msra.mxu1 %v1256_v48  ;;  %612 = vmatpush.bf16.msra.mxu2 %v1260_v49  ;;  %v1228_v9 = vor.u32 %v1556_v4, %v1227_v3  ;;  %v1203_v10 = vld [vmem:[#allocation7 + $0x20] sm:$0xf]  ;;  %v1551_v11 = vld [vmem:[#allocation7 + $0x2c] sm:$0xf0]  ;;  %v1549_v12 = vld [vmem:[#allocation7 + $0x24] sm:$0xf]  ;;  %v1232_v13 = vor.u32 %v1554_v5, %v1229_v6 }
  0x2d   : > { %625 = vmatpush.bf16.msra.mxu3 %v1264_v53  ;;  %v1205_v14 = vld [vmem:[#allocation7 + $0x30] sm:$0xf0]  ;;  %v1211_v15 = vld [vmem:[#allocation7 + $0x28] sm:$0xf]  ;;  %v1552_v16 = vld [vmem:[#allocation7 + $0x34] sm:$0xf0]  ;;  %v1204_v19 = vor.u32 %v1551_v11, %v1203_v10 }
  0x2e   : > { %v1550_v17 = vld [vmem:[#allocation7 + $0x2c] sm:$0xf]  ;;  %v1213_v18 = vld [vmem:[#allocation7 + $0x38] sm:$0xf0]  ;;  %v1187_v20 = vld [vmem:[#allocation7] sm:$0xf]  ;;  %v1208_v22 = vor.u32 %v1549_v12, %v1205_v14  ;;  %v1212_v23 = vor.u32 %v1552_v16, %v1211_v15 }
  0x2f   : > { %587 = vmatpush.bf16.msra.mxu0 %v1236_v59  ;;  %v1547_v21 = vld [vmem:[#allocation7 + $0xc] sm:$0xf0]  ;;  %v1545_v24 = vld [vmem:[#allocation7 + $0x4] sm:$0xf]  ;;  %v1189_v25 = vld [vmem:[#allocation7 + $0x10] sm:$0xf0]  ;;  %v1216_v27 = vor.u32 %v1550_v17, %v1213_v18 }
  0x30   : > { %600 = vmatpush.bf16.msra.mxu1 %v1240_v60  ;;  %613 = vmatpush.bf16.msra.mxu2 %v1244_v61  ;;  %v1195_v26 = vld [vmem:[#allocation7 + $0x8] sm:$0xf]  ;;  %v1548_v28 = vld [vmem:[#allocation7 + $0x14] sm:$0xf0]  ;;  %v1546_v29 = vld [vmem:[#allocation7 + $0xc] sm:$0xf]  ;;  %v1188_v34 = vor.u32 %v1547_v21, %v1187_v20  ;;  %v1192_v38 = vor.u32 %v1545_v24, %v1189_v25 }
  0x31   : > { %626 = vmatpush.bf16.msra.mxu3 %v1248_v1  ;;  %v1197_v30 = vld [vmem:[#allocation7 + $0x18] sm:$0xf0]  ;;  %v1427_v31 = vld [vmem:[#allocation5 + $0xe0] sm:$0xf]  ;;  %v1543_v32 = vld [vmem:[#allocation5 + $0xec] sm:$0xf0]  ;;  %v1196_v39 = vor.u32 %v1548_v28, %v1195_v26 }
  0x32   : > { %v1541_v33 = vld [vmem:[#allocation5 + $0xe4] sm:$0xf]  ;;  %v1429_v35 = vld [vmem:[#allocation5 + $0xf0] sm:$0xf0]  ;;  %v1435_v36 = vld [vmem:[#allocation5 + $0xe8] sm:$0xf]  ;;  %v1200_v43 = vor.u32 %v1546_v29, %v1197_v30  ;;  %v1428_v44 = vor.u32 %v1543_v32, %v1427_v31 }
  0x33   : > { %588 = vmatpush.bf16.msra.mxu0 %v1220_v7  ;;  %v1544_v37 = vld [vmem:[#allocation5 + $0xf4] sm:$0xf0]  ;;  %v1542_v40 = vld [vmem:[#allocation5 + $0xec] sm:$0xf]  ;;  %v1437_v41 = vld [vmem:[#allocation5 + $0xf8] sm:$0xf0]  ;;  %v1432_v45 = vor.u32 %v1541_v33, %v1429_v35 }
  0x34   : > { %601 = vmatpush.bf16.msra.mxu1 %v1224_v8  ;;  %614 = vmatpush.bf16.msra.mxu2 %v1228_v9  ;;  %v356_v42 = vld [vmem:[#allocation2] sm:$0xff]  ;;  %v1436_v46 = vor.u32 %v1544_v37, %v1435_v36  ;;  %v1411_v47 = vld [vmem:[#allocation5 + $0xc0] sm:$0xf]  ;;  %v1537_v49 = vld [vmem:[#allocation5 + $0xc4] sm:$0xf]  ;;  %v1440_v50 = vor.u32 %v1542_v40, %v1437_v41 }
  0x35   : > { %627 = vmatpush.bf16.msra.mxu3 %v1232_v13  ;;  %v1539_v48 = vld [vmem:[#allocation5 + $0xcc] sm:$0xf0]  ;;  %v1413_v51 = vld [vmem:[#allocation5 + $0xd0] sm:$0xf0]  ;;  %v1419_v52 = vld [vmem:[#allocation5 + $0xc8] sm:$0xf]  ;;  %v390_v54 = vpack.c.bf16 %v356_v42, %v356_v42 }
  0x36   : > { %v1540_v53 = vld [vmem:[#allocation5 + $0xd4] sm:$0xf0]  ;;  %v1538_v55 = vld [vmem:[#allocation5 + $0xcc] sm:$0xf]  ;;  %v1421_v56 = vld [vmem:[#allocation5 + $0xd8] sm:$0xf0]  ;;  %v1412_v57 = vor.u32 %v1539_v48, %v1411_v47  ;;  %v1416_v58 = vor.u32 %v1537_v49, %v1413_v51 }
  0x37   : > { %589 = vmatpush.bf16.msra.mxu0 %v1204_v19  ;;  %v1420_v59 = vor.u32 %v1540_v53, %v1419_v52  ;;  %v1395_v60 = vld [vmem:[#allocation5 + $0xa0] sm:$0xf]  ;;  %v1535_v61 = vld [vmem:[#allocation5 + $0xac] sm:$0xf0]  ;;  %v1533_v62 = vld [vmem:[#allocation5 + $0xa4] sm:$0xf]  ;;  %v1424_v63 = vor.u32 %v1538_v55, %v1421_v56 }
  0x38   : > { %602 = vmatpush.bf16.msra.mxu1 %v1208_v22  ;;  %615 = vmatpush.bf16.msra.mxu2 %v1212_v23  ;;  %v1397_v0 = vld [vmem:[#allocation5 + $0xb0] sm:$0xf0]  ;;  %v1403_v1 = vld [vmem:[#allocation5 + $0xa8] sm:$0xf]  ;;  %v1536_v2 = vld [vmem:[#allocation5 + $0xb4] sm:$0xf0]  ;;  %v1396_v5 = vor.u32 %v1535_v61, %v1395_v60 }
  0x39   : > { %628 = vmatpush.bf16.msra.mxu3 %v1216_v27  ;;  %v1534_v3 = vld [vmem:[#allocation5 + $0xac] sm:$0xf]  ;;  %v1405_v4 = vld [vmem:[#allocation5 + $0xb8] sm:$0xf0]  ;;  %v1400_v6 = vor.u32 %v1533_v62, %v1397_v0  ;;  %v1404_v7 = vor.u32 %v1536_v2, %v1403_v1  ;;  %v1379_v8 = vld [vmem:[#allocation5 + $0x80] sm:$0xf] }
  0x3a   : > { %v1531_v9 = vld [vmem:[#allocation5 + $0x8c] sm:$0xf0]  ;;  %v1529_v10 = vld [vmem:[#allocation5 + $0x84] sm:$0xf]  ;;  %v1408_v11 = vor.u32 %v1534_v3, %v1405_v4  ;;  %v1381_v12 = vld [vmem:[#allocation5 + $0x90] sm:$0xf0] }
  0x3b   : > { %590 = vmatpush.bf16.msra.mxu0 %v1188_v34  ;;  %v1387_v13 = vld [vmem:[#allocation5 + $0x88] sm:$0xf]  ;;  %v1532_v14 = vld [vmem:[#allocation5 + $0x94] sm:$0xf0]  ;;  %v1530_v15 = vld [vmem:[#allocation5 + $0x8c] sm:$0xf]  ;;  %v1380_v17 = vor.u32 %v1531_v9, %v1379_v8  ;;  %v1384_v19 = vor.u32 %v1529_v10, %v1381_v12 }
  0x3c   : > { %603 = vmatpush.bf16.msra.mxu1 %v1192_v38  ;;  %616 = vmatpush.bf16.msra.mxu2 %v1196_v39  ;;  %v1389_v16 = vld [vmem:[#allocation5 + $0x98] sm:$0xf0]  ;;  %v1363_v18 = vld [vmem:[#allocation5 + $0x60] sm:$0xf]  ;;  %v1388_v20 = vor.u32 %v1532_v14, %v1387_v13  ;;  %v1527_v21 = vld [vmem:[#allocation5 + $0x6c] sm:$0xf0] }
  0x3d   : > { %629 = vmatpush.bf16.msra.mxu3 %v1200_v43  ;;  %v1525_v22 = vld [vmem:[#allocation5 + $0x64] sm:$0xf]  ;;  %v1365_v23 = vld [vmem:[#allocation5 + $0x70] sm:$0xf0]  ;;  %v1392_v24 = vor.u32 %v1530_v15, %v1389_v16  ;;  %v1371_v25 = vld [vmem:[#allocation5 + $0x68] sm:$0xf]  ;;  %v1364_v29 = vor.u32 %v1527_v21, %v1363_v18 }
  0x3e   : > { %591 = vmatmul.bf16.vlgmr.msra.gmra.mxu0 %v390_v54  ;;  %v1528_v26 = vld [vmem:[#allocation5 + $0x74] sm:$0xf0]  ;;  %v1526_v27 = vld [vmem:[#allocation5 + $0x6c] sm:$0xf]  ;;  %v1373_v28 = vld [vmem:[#allocation5 + $0x78] sm:$0xf0]  ;;  %v1368_v30 = vor.u32 %v1525_v22, %v1365_v23 }
  0x3f   : > { %795 = vmatpush.bf16.msrb.mxu0 %v1428_v44  ;;  %604 = vmatmul.bf16.vlgmr.msra.gmra.mxu1 %v390_v54  ;;  %v1372_v31 = vor.u32 %v1528_v26, %v1371_v25  ;;  %v1347_v32 = vld [vmem:[#allocation5 + $0x40] sm:$0xf]  ;;  %v1523_v33 = vld [vmem:[#allocation5 + $0x4c] sm:$0xf0]  ;;  %v1521_v34 = vld [vmem:[#allocation5 + $0x44] sm:$0xf]  ;;  %v1376_v35 = vor.u32 %v1526_v27, %v1373_v28 }
  0x40   : > { %808 = vmatpush.bf16.msrb.mxu1 %v1432_v45  ;;  %821 = vmatpush.bf16.msrb.mxu2 %v1436_v46  ;;  %v1349_v36 = vld [vmem:[#allocation5 + $0x50] sm:$0xf0]  ;;  %v1355_v37 = vld [vmem:[#allocation5 + $0x48] sm:$0xf]  ;;  %v1524_v38 = vld [vmem:[#allocation5 + $0x54] sm:$0xf0]  ;;  %v1348_v41 = vor.u32 %v1523_v33, %v1347_v32 }
  0x41   : > { %834 = vmatpush.bf16.msrb.mxu3 %v1440_v50  ;;  %617 = vmatmul.bf16.vlgmr.msra.gmra.mxu2 %v390_v54  ;;  %v1522_v39 = vld [vmem:[#allocation5 + $0x4c] sm:$0xf]  ;;  %v1357_v40 = vld [vmem:[#allocation5 + $0x58] sm:$0xf0]  ;;  %v1352_v42 = vor.u32 %v1521_v34, %v1349_v36  ;;  %v1356_v43 = vor.u32 %v1524_v38, %v1355_v37  ;;  %v1331_v44 = vld [vmem:[#allocation5 + $0x20] sm:$0xf] }
  0x42   : > { %630 = vmatmul.bf16.vlgmr.msra.gmra.mxu3 %v390_v54  ;;  %v1519_v45 = vld [vmem:[#allocation5 + $0x2c] sm:$0xf0]  ;;  %v1517_v46 = vld [vmem:[#allocation5 + $0x24] sm:$0xf]  ;;  %v1360_v47 = vor.u32 %v1522_v39, %v1357_v40  ;;  %v1333_v48 = vld [vmem:[#allocation5 + $0x30] sm:$0xf0] }
  0x43   : > { %796 = vmatpush.bf16.msrb.mxu0 %v1412_v57  ;;  %v1339_v49 = vld [vmem:[#allocation5 + $0x28] sm:$0xf]  ;;  %v1520_v50 = vld [vmem:[#allocation5 + $0x34] sm:$0xf0]  ;;  %v1518_v51 = vld [vmem:[#allocation5 + $0x2c] sm:$0xf]  ;;  %v1332_v53 = vor.u32 %v1519_v45, %v1331_v44  ;;  %v1336_v54 = vor.u32 %v1517_v46, %v1333_v48 }
  0x44   : > { %809 = vmatpush.bf16.msrb.mxu1 %v1416_v58  ;;  %822 = vmatpush.bf16.msrb.mxu2 %v1420_v59  ;;  %v1341_v52 = vld [vmem:[#allocation5 + $0x38] sm:$0xf0]  ;;  %v1340_v55 = vor.u32 %v1520_v50, %v1339_v49  ;;  %v1315_v56 = vld [vmem:[#allocation5] sm:$0xf]  ;;  %v1515_v57 = vld [vmem:[#allocation5 + $0xc] sm:$0xf0] }
  0x45   : > { %835 = vmatpush.bf16.msrb.mxu3 %v1424_v63  ;;  %v1513_v58 = vld [vmem:[#allocation5 + $0x4] sm:$0xf]  ;;  %v1344_v59 = vor.u32 %v1518_v51, %v1341_v52  ;;  %v1317_v60 = vld [vmem:[#allocation5 + $0x10] sm:$0xf0]  ;;  %v1323_v61 = vld [vmem:[#allocation5 + $0x8] sm:$0xf]  ;;  %v1316_v1 = vor.u32 %v1515_v57, %v1315_v56 }
  0x46   : > { %v1516_v62 = vld [vmem:[#allocation5 + $0x14] sm:$0xf0]  ;;  %v1514_v63 = vld [vmem:[#allocation5 + $0xc] sm:$0xf]  ;;  %v1325_v0 = vld [vmem:[#allocation5 + $0x18] sm:$0xf0]  ;;  %v1320_v2 = vor.u32 %v1513_v58, %v1317_v60 }
  0x47   : > { %797 = vmatpush.bf16.msrb.mxu0 %v1396_v5  ;;  %v1324_v3 = vor.u32 %v1516_v62, %v1323_v61  ;;  %v1328_v4 = vor.u32 %v1514_v63, %v1325_v0  ;;  %v355_v5 = vld [vmem:[#allocation4] sm:$0xf]  ;;  %v1584_v12 = vld [vmem:[%s1892_s7 + $0x38] sm:$0xff]  ;;  %v1582_v16 = vld [vmem:[%s1892_s7 + $0x28] sm:$0xff] }
  0x48   : > { %810 = vmatpush.bf16.msrb.mxu1 %v1400_v6  ;;  %823 = vmatpush.bf16.msrb.mxu2 %v1404_v7  ;;  %v1583_v15 = vld [vmem:[%s1892_s7 + $0x30] sm:$0xff]  ;;  %v1581_v18 = vld [vmem:[%s1892_s7 + $0x20] sm:$0xff]  ;;  %v1578_v33 = vld [vmem:[%s1892_s7 + $0x8] sm:$0xff] }
  0x49   : > { %836 = vmatpush.bf16.msrb.mxu3 %v1408_v11  ;;  %v1577_v39 = vld [vmem:[%s1892_s7] sm:$0xff] }
  0x4b   : > { %798 = vmatpush.bf16.msrb.mxu0 %v1380_v17  ;;  %v847_v17 = vld [vmem:[%s1891_s6] sm:$0xf] }
  0x4c   : > { %811 = vmatpush.bf16.msrb.mxu1 %v1384_v19  ;;  %824 = vmatpush.bf16.msrb.mxu2 %v1388_v20  ;;  %v849_v19 = vperm.slane %v847_v17, 0  ;;  %v850_v21 = vperm.slane %v847_v17, 1  ;;  %v852_v32 = vperm.slane %v847_v17, 3  ;;  %v851_v48 = vperm.slane %v847_v17, 2 }
  0x4d   : > { %837 = vmatpush.bf16.msrb.mxu3 %v1392_v24  ;;  %v1580_v24 = vld [vmem:[%s1892_s7 + $0x18] sm:$0xff] }
  0x4f   : > { %799 = vmatpush.bf16.msrb.mxu0 %v1364_v29  ;;  %v1579_v29 = vld [vmem:[%s1892_s7 + $0x10] sm:$0xff] }
  0x50   : > { %812 = vmatpush.bf16.msrb.mxu1 %v1368_v30  ;;  %825 = vmatpush.bf16.msrb.mxu2 %v1372_v31 }
  0x51   : > { %838 = vmatpush.bf16.msrb.mxu3 %v1376_v35 }
  0x53   : > { %800 = vmatpush.bf16.msrb.mxu0 %v1348_v41 }
  0x54   : > { %813 = vmatpush.bf16.msrb.mxu1 %v1352_v42  ;;  %826 = vmatpush.bf16.msrb.mxu2 %v1356_v43 }
  0x55   : > { %839 = vmatpush.bf16.msrb.mxu3 %v1360_v47 }
  0x57   : > { %801 = vmatpush.bf16.msrb.mxu0 %v1332_v53 }
  0x58   : > { %814 = vmatpush.bf16.msrb.mxu1 %v1336_v54  ;;  %827 = vmatpush.bf16.msrb.mxu2 %v1340_v55 }
  0x59   : > { %840 = vmatpush.bf16.msrb.mxu3 %v1344_v59 }
  0x5b   : > { %802 = vmatpush.bf16.msrb.mxu0 %v1316_v1 }
  0x5c   : > { %815 = vmatpush.bf16.msrb.mxu1 %v1320_v2  ;;  %828 = vmatpush.bf16.msrb.mxu2 %v1324_v3 }
  0x5d   : > { %841 = vmatpush.bf16.msrb.mxu3 %v1328_v4 }
  0x5e   : > { %803 = vmatmul.bf16.vlgmr.msrb.gmra.mxu0 %v355_v5 }
  0x5f   : > { %816 = vmatmul.bf16.vlgmr.msrb.gmra.mxu1 %v355_v5  ;;  %829 = vmatmul.bf16.vlgmr.msrb.gmra.mxu2 %v355_v5 }
  0x60   : > { %842 = vmatmul.bf16.vlgmr.msrb.gmra.mxu3 %v355_v5  ;;  %995 = vmatpush.bf16.msra.mxu0 %v1584_v12  ;;  %v357_v5 = vld [vmem:[#allocation3] sm:$0xff] }
  0x64   : > { %996 = vmatpush.bf16.msra.mxu0 %v1583_v15 }
  0x68   : > { %997 = vmatpush.bf16.msra.mxu0 %v1582_v16 }
  0x6c   : > { %998 = vmatpush.bf16.msra.mxu0 %v1581_v18 }
  0x70   : > { %999 = vmatpush.bf16.msra.mxu0 %v1580_v24 }
  0x74   : > { %1000 = vmatpush.bf16.msra.mxu0 %v1579_v29 }
  0x78   : > { %1001 = vmatpush.bf16.msra.mxu0 %v1578_v33 }
  0x7c   : > { %1002 = vmatpush.bf16.msra.mxu0 %v1577_v39  ;;  %v1589_v39 = vld [vmem:[%s1888_s3 + $0x20] sm:$0xff] }
  0xbb   : > { %v592_v6 = vpop.f32.mrf.mxu0 }
  0xbc   : > { %v605_v7 = vpop.f32.mrf.mxu1 }
  0xc3   : > { %v594_v9 = vpop.f32.mrf.mxu0 }
  0xc4   : > { %v618_v10 = vpop.f32.mrf.mxu2  ;;  %v607_v11 = vpop.f32.mrf.mxu1 }
  0xc5   : > { %v631_v8 = vpop.f32.mrf.mxu3 }
  0xcc   : > { %v620_v14 = vpop.f32.mrf.mxu2 }
  0xcd   : > { %v633_v13 = vpop.f32.mrf.mxu3 }
  0xdb   : > { %v804_v20 = vpop.f32.mrf.mxu0 }
  0xdc   : > { %v805_v22 = vadd.f32 %v804_v20, %v592_v6  ;;  %v817_v23 = vpop.f32.mrf.mxu1 }
  0xdd   : > { %v818_v25 = vadd.f32 %v817_v23, %v605_v7 }
  0xde   : > { %v857_v26 = vadd.f32 %v849_v19, %v805_v22 }
  0xdf   : > { %v858_v27 = vadd.f32 %v850_v21, %v818_v25 }
  0xe0   : > { %v1441_v28 = vmul.f32 -1.442695, %v857_v26  ;;  %v1625_v26 = vld [vmem:[%s1893_s8] ss:$0 sm:$0xff] }
  0xe1   : > { %v1442_v30 = vmul.f32 -1.442695, %v858_v27 }
  0xe2   : > { %1626 = vpow2.f32 %v1441_v28  ;;  %v830_v31 = vpop.f32.mrf.mxu2 }
  0xe3   : > { %1628 = vpow2.f32 %v1442_v30  ;;  %v843_v34 = vpop.f32.mrf.mxu3  ;;  %v806_v35 = vpop.f32.mrf.mxu0  ;;  %v831_v47 = vadd.f32 %v830_v31, %v618_v10  ;;  %v1009_v30 = vlaneseq }
  0xe4   : > { %v844_v36 = vadd.f32 %v843_v34, %v631_v8  ;;  %v819_v37 = vpop.f32.mrf.mxu1 }
  0xe5   : > { %v859_v51 = vadd.f32 %v851_v48, %v831_v47  ;;  %v1010_v31 = vand.u32 127, %v1009_v30  ;;  %v1591_v37 = vld [vmem:[%s1888_s3 + $0x30] sm:$0xff]  ;;  %v1585_v47 = vld [vmem:[%s1888_s3] sm:$0xff] }
  0xe6   : > { %v860_v38 = vadd.f32 %v852_v32, %v844_v36  ;;  %v1592_v36 = vld [vmem:[%s1888_s3 + $0x38] sm:$0xff] }
  0xe7   : > { %1097 = vmatpush.bf16.msra.mxu1 %v1592_v36 }
  0xe8   : > { %v1627_v40 = vpop.eup %1626  ;;  %v1443_v41 = vmul.f32 -1.442695, %v860_v38  ;;  %v1590_v38 = vld [vmem:[%s1888_s3 + $0x28] sm:$0xff] }
  0xe9   : > { %v1629_v42 = vpop.eup %1628  ;;  %v864_v43 = vadd.f32 1.0, %v1627_v40  ;;  %v1588_v40 = vld [vmem:[%s1888_s3 + $0x18] sm:$0xff] }
  0xea   : > { %v883_v44 = vadd.f32 1.0, %v1629_v42  ;;  %1630 = vpow2.f32 %v1443_v41  ;;  %v832_v45 = vpop.f32.mrf.mxu2  ;;  %v1587_v41 = vld [vmem:[%s1888_s3 + $0x10] sm:$0xff]  ;;  %v1586_v42 = vld [vmem:[%s1888_s3 + $0x8] sm:$0xff] }
  0xeb   : > { %1632 = vrcp.f32 %v864_v43  ;;  %v845_v46 = vpop.f32.mrf.mxu3  ;;  %v876_v58 = vand.u32 2147483648, %v864_v43  ;;  %v874_v61 = vand.u32 2147483647, %v864_v43  ;;  %vm870_vm2 = vweird.f32 %v864_v43  ;;  %1098 = vmatpush.bf16.msra.mxu1 %v1591_v37 }
  0xec   : > { %1634 = vrcp.f32 %v883_v44  ;;  %v895_v59 = vand.u32 2147483648, %v883_v44  ;;  %v893_v63 = vand.u32 2147483647, %v883_v44  ;;  %vm889_vm3 = vweird.f32 %v883_v44 }
  0xed   : > { %v877_v2 = vor.u32 1.1754944e-38, %v876_v58  ;;  %vm875_vm6 = vcmp.eq.f32.partialorder %v874_v61, 8.507059e+37 }
  0xee   : > { %v896_v4 = vor.u32 1.1754944e-38, %v895_v59  ;;  %vm894_vm7 = vcmp.eq.f32.partialorder %v893_v63, 8.507059e+37 }
  0xef   : > { %1099 = vmatpush.bf16.msra.mxu1 %v1590_v38 }
  0xf0   : > { %v1631_v49 = vpop.eup %1630 }
  0xf1   : > { %v1633_v50 = vpop.eup %1632  ;;  %v903_v52 = vadd.f32 1.0, %v1631_v49 }
  0xf2   : > { %v1635_v53 = vpop.eup %1634  ;;  %v866_v54 = vmul.f32 %v1633_v50, %v864_v43  ;;  %vm871_vm0 = vweird.f32 %v1633_v50 }
  0xf3   : > { %v885_v55 = vmul.f32 %v1635_v53, %v883_v44  ;;  %1636 = vrcp.f32 %v903_v52  ;;  %vm890_vm1 = vweird.f32 %v1635_v53  ;;  %vm872_vm4 = vmor %vm870_vm2, %vm871_vm0  ;;  %v915_v18 = vand.u32 2147483648, %v903_v52  ;;  %1100 = vmatpush.bf16.msra.mxu1 %v1589_v39 }
  0xf4   : > { %v867_v56 = vsub.f32 1.0, %v866_v54  ;;  %1638 = vtanh.f32 %v859_v51  ;;  %vm891_vm5 = vmor %vm889_vm3, %vm890_vm1  ;;  %vm909_vm9 = vweird.f32 %v903_v52  ;;  %v913_v19 = vand.u32 2147483647, %v903_v52 }
  0xf5   : > { %v886_v57 = vsub.f32 1.0, %v885_v55  ;;  %v916_v21 = vor.u32 1.1754944e-38, %v915_v18 }
  0xf6   : > { %v868_v60 = vmul.f32 %v1633_v50, %v867_v56  ;;  %vm914_vm11 = vcmp.eq.f32.partialorder %v913_v19, 8.507059e+37 }
  0xf7   : > { %v887_v62 = vmul.f32 %v1635_v53, %v886_v57  ;;  %1101 = vmatpush.bf16.msra.mxu1 %v1588_v40 }
  0xf8   : > { %v869_v0 = vadd.f32 %v1633_v50, %v868_v60 }
  0xf9   : > { %v1637_v1 = vpop.eup %1636  ;;  %v888_v3 = vadd.f32 %v1635_v53, %v887_v62 }
  0xfa   : > { %v873_v6 = vsel %vm872_vm4, %v1633_v50, %v869_v0  ;;  %v905_v7 = vmul.f32 %v1637_v1, %v903_v52  ;;  %v1639_v8 = vpop.eup %1638  ;;  %vm910_vm8 = vweird.f32 %v1637_v1 }
  0xfb   : > { %v878_v9 = vsel %vm875_vm6, %v877_v2, %v873_v6  ;;  %v892_v10 = vsel %vm891_vm5, %v1635_v53, %v888_v3  ;;  %vm911_vm10 = vmor %vm909_vm9, %vm910_vm8  ;;  %1102 = vmatpush.bf16.msra.mxu1 %v1587_v41  ;;  %v1722_v53 = vmov 1.0|1.0  }
  0xfc   : > { %v897_v11 = vsel %vm894_vm7, %v896_v4, %v892_v10  ;;  %v920_v12 = vmul.f32 %v1639_v8, %v878_v9  ;;  %v906_v13 = vsub.f32 1.0, %v905_v7 }
  0xfd   : > { %v919_v14 = vmul.f32 %v897_v11, %v357_v5 }
  0xfe   : > { %v907_v15 = vmul.f32 %v1637_v1, %v906_v13 }
  0xff   : > { %v921_v16 = vadd.f32 %v920_v12, %v919_v14  ;;  %1103 = vmatpush.bf16.msra.mxu1 %v1586_v42 }
 0x100   : > { %v908_v17 = vadd.f32 %v1637_v1, %v907_v15 }
 0x101   : > { %1640 = vtanh.f32 %v921_v16  ;;  %925 = vst [vmem:[#allocation3] sm:$0xff] %v921_v16 }
 0x102   : > { %v912_v20 = vsel %vm911_vm10, %v1637_v1, %v908_v17 }
 0x103   : > { %v917_v23 = vsel %vm914_vm11, %v916_v21, %v912_v20  ;;  %1104 = vmatpush.bf16.msra.mxu1 %v1585_v47 }
 0x107   : > { %v1641_v22 = vpop.eup %1640 }
 0x108   : > { %v923_v24 = vmul.f32 %v1641_v22, %v917_v23 }
 0x10a   : > { %924 = vst [vmem:[#allocation2] sm:$0xff] %v923_v24  ;;  %v926_v25 = vpack.c.bf16 %v923_v24, %v923_v24 }
 0x10c   : > { %1003 = vmatmul.bf16.vlgmr.msra.gmra.mxu0 %v926_v25 }
 0x189   : > { %v1004_v27 = vpop.f32.mrf.mxu0 }
 0x18a   : > { %v1005_v28 = vadd.f32 %v1625_v26, %v1004_v27 }
 0x18c   : > { %1008 = vst [vmem:[%s1814_s28] sm:$0xff] %v1005_v28  ;;  %1011 = vmax.xlane.f32.xlu0 %v1005_v28 }
 0x191   : > { %v1006_v29 = vpop.f32.mrf.mxu0 }
 0x1ff   : > { %v1012_v32 = vpop.xlane.xlu0 %1011 }
 0x200   : > { %vm1013_vm12 = vcmp.eq.f32.partialorder %v1005_v28, %v1012_v32 }
 0x201   : > { %v1014_v33 = vsel %vm1013_vm12, %v1010_v31, 128 }
 0x202   : > { %v1016_v34 = vshra.s32 %v1014_v33, 16  ;;  %v1015_v43 = vand.u32 65535, %v1014_v33 }
 0x204   : > { %v1018_v35 = vcvt.s32.f32 %v1016_v34  ;;  %v1017_v45 = vcvt.s32.f32 %v1015_v43 }
 0x206   : > { %1019 = vmin.xlane.f32.xlu0 %v1018_v35 }
 0x279   : > { %v1020_v44 = vpop.xlane.xlu0 %1019 }
 0x27a   : > { %vm1021_vm13 = vcmp.eq.f32.partialorder %v1018_v35, %v1020_v44  ;;  %v1026_v48 = vcvt.f32.s32 %v1020_v44 }
 0x27b   : > { %v1022_v46 = vsel %vm1021_vm13, %v1017_v45, inf }
 0x27c   : > { %1023 = vmin.xlane.f32.xlu1 %v1022_v46  ;;  %v1027_v50 = vshll.u32 %v1026_v48, 16 }
 0x2ef   : > { %v1024_v49 = vpop.xlane.xlu1 %1023 }
 0x2f0   : > { %v1025_v51 = vcvt.f32.s32 %v1024_v49 }
 0x2f2   : > { %v1028_v52 = vadd.s32 %v1027_v50, %v1025_v51 }
 0x2f4   : > { %vm1029_vm14 = vcmp.eq.s32.totalorder %v1010_v31, %v1028_v52 }
 0x2f5   : > { %vm1509_vm15 = vmpackc.low %vm1029_vm14, %vm1029_vm14 }
 0x2f6   : > { %1510 = vmatmul.msk.bf16.vlgmr.msra.gmra.mxu1 %vm1509_vm15, %v1722_v53 }
 0x373   : > { %v1106_v54 = vpop.f32.mrf.mxu1 }
 0x374   : > { %v1110_v55 = vpack.c.bf16 %v1106_v54, %v1106_v54 }
 0x376   : > { %1111 = vst [vmem:[#allocation4] sm:$0xf] %v1110_v55 }
 0x37b   : > { %v1108_v56 = vpop.f32.mrf.mxu1 }
 0x37c PF: > { %s21_s30 = sadd.s32 1, %s1716_s30  }
 0x37d   : > { %p18_p8 = scmp.ge.s32.totalorder %s21_s30, 9  }
 0x37f   :  { %20 = sbr.rel (!%p18_p8) target bundleno = 2 (0x2), region = 96 }
 0x384   :  { %1131 = vsyncpa [#allocation6], 1 }
 0x385   :  { %1133 = vsyncpa [#allocation6 + $0x1], 1 }
 0x386   :  { %1134 = vsyncpa [#allocation8], 1 }

// kernel: seq2seq_forward.2
= control target key start
LH: loop header
LB: loop body
LE: loop exit
PB: predicated region body
PF: predicated region fallthrough
CT: control target
= control target key end

     0   :  { %11 = vsyncpa [#allocation5], 0  ;;  %s1294_s18 = smov 0   ;;  %s1516_s0 = inlined_call_operand.vmem [shape: bf16[8,8,128], index: 0, kind: input, shape index: {}]   ;;  %s1517_s1 = inlined_call_operand.vmem [shape: bf16[128,512], index: 1, kind: input, shape index: {}]   ;;  %s1518_s2 = inlined_call_operand.hbm [shape: bf16[128,512], index: 2, kind: input, shape index: {}]   ;;  %s1519_s3 = inlined_call_operand.vmem [shape: f32[1,512], index: 3, kind: input, shape index: {}]   ;;  %s1520_s4 = inlined_call_operand.vmem [shape: f32[8,128], index: 4, kind: output, shape index: {0}]   ;;  %s1521_s5 = inlined_call_operand.vmem [shape: f32[8,128], index: 5, kind: output, shape index: {1}]  }
   0x1 LB: > { %s167_s21 = sshll.u32 %s1518_s2, 4  ;;  %s847_s22 = sadd.s32 4294967295, %s1258_s18   ;;  %s1258_s18 = sphi %s1294_s18, %s17_s18   ;;  %s168_s21 = int_to_ptr.hbm [resolvable:$true] %s167_s21 }
   0x2   : > { %p848_p0 = scmp.ge.s32.totalorder %s1258_s18, 1  ;;  %p153_p1 = scmp.lt.s32.totalorder %s1258_s18, 9 }
   0x3   : > { %p849_p2 = scmp.ne.s32.totalorder %s847_s22, 0  ;;  %p1188_p3 = scmp.eq.s32.totalorder %s847_s22, 0 }
   0x4   : > { %p154_p4 = pnand %p848_p0, %p153_p1  ;;  %s1260_s23 = smov [#allocation4]  }
   0x5   : > { %s169_s24 = sshll.u32 %s1260_s23, 4  ;;  %s1261_s25 = smov 256   ;;  %s170_s24 = int_to_ptr.vmem [resolvable:$true] %s169_s24 }
   0x6   : > { %p1184_p5 = pneg %p154_p4  ;;  %s1262_s26 = smov 16  }
   0x7   : > { %195 = sbr.rel (%p154_p4) target bundleno = 262 (0x106), region = 36 }
   0x8   : > { %p1185_p6 = pnand %p1188_p3, %p1184_p5 }
   0xa   : > { %1187 = dma.hbm_to_vmem [thread:$0]  (!%p1185_p6), %s168_s21, 4096, %s170_s24, [#allocation5], %s1261_s25, %s1261_s25, %s1262_s26  }
   0xc   : > { %1253 = dma.done.wait (%p1188_p3), [#allocation5], 4096  }
   0xd   : > { %1255 = vsyncadd (%p1188_p3), [#allocation5], 4294963200  ;;  %p218_p7 = scmp.lt.s32.totalorder %s847_s22, 7 }
   0xe   : > { %225 = sbr.rel (%p849_p2) target bundleno = 22 (0x16), region = 44 }
   0xf   : > { %s219_s27 = scalar_select %p218_p7, %s847_s22, 7 }
  0x11   : > { %s853_s28 = sshll.u32 %s219_s27, 2 }
  0x12   : > { %s1308_s6 = scalar_lea.vmem %s1516_s0, %s853_s28 }
  0x13   : > { %v1263_v0 = vmov 0.0  }
  0x14   : > { %226 = vst [vmem:[#allocation2] sm:$0xff] %v1263_v0 }
  0x15   : > { %227 = vst [vmem:[#allocation3] sm:$0xff] %v1263_v0 }
  0x16 PF: > { %v969_v1 = vld [vmem:[#allocation4 + $0xe0] sm:$0xf]  ;;  %v1178_v2 = vld [vmem:[#allocation4 + $0xec] sm:$0xf0]  ;;  %v1176_v3 = vld [vmem:[#allocation4 + $0xe4] sm:$0xf] }
  0x17   : > { %v970_v4 = vor.u32 %v1178_v2, %v969_v1  ;;  %v971_v5 = vld [vmem:[#allocation4 + $0xf0] sm:$0xf0]  ;;  %v977_v6 = vld [vmem:[#allocation4 + $0xe8] sm:$0xf]  ;;  %v1179_v7 = vld [vmem:[#allocation4 + $0xf4] sm:$0xf0] }
  0x18   : > { %v974_v8 = vor.u32 %v1176_v3, %v971_v5  ;;  %v978_v9 = vor.u32 %v1179_v7, %v977_v6  ;;  %v1177_v10 = vld [vmem:[#allocation4 + $0xec] sm:$0xf]  ;;  %v979_v11 = vld [vmem:[#allocation4 + $0xf8] sm:$0xf0]  ;;  %v953_v12 = vld [vmem:[#allocation4 + $0xc0] sm:$0xf] }
  0x19   : > { %456 = vmatpush.bf16.msra.mxu0 %v970_v4  ;;  %v982_v13 = vor.u32 %v1177_v10, %v979_v11  ;;  %v1174_v14 = vld [vmem:[#allocation4 + $0xcc] sm:$0xf0]  ;;  %v1172_v15 = vld [vmem:[#allocation4 + $0xc4] sm:$0xf]  ;;  %v955_v16 = vld [vmem:[#allocation4 + $0xd0] sm:$0xf0] }
  0x1a   : > { %469 = vmatpush.bf16.msra.mxu1 %v974_v8  ;;  %482 = vmatpush.bf16.msra.mxu2 %v978_v9  ;;  %v954_v17 = vor.u32 %v1174_v14, %v953_v12  ;;  %v958_v18 = vor.u32 %v1172_v15, %v955_v16  ;;  %v961_v19 = vld [vmem:[#allocation4 + $0xc8] sm:$0xf]  ;;  %v1175_v20 = vld [vmem:[#allocation4 + $0xd4] sm:$0xf0]  ;;  %v1173_v21 = vld [vmem:[#allocation4 + $0xcc] sm:$0xf] }
  0x1b   : > { %495 = vmatpush.bf16.msra.mxu3 %v982_v13  ;;  %v962_v22 = vor.u32 %v1175_v20, %v961_v19  ;;  %v963_v23 = vld [vmem:[#allocation4 + $0xd8] sm:$0xf0]  ;;  %v937_v24 = vld [vmem:[#allocation4 + $0xa0] sm:$0xf]  ;;  %v1170_v25 = vld [vmem:[#allocation4 + $0xac] sm:$0xf0] }
  0x1c   : > { %v966_v26 = vor.u32 %v1173_v21, %v963_v23  ;;  %v1168_v27 = vld [vmem:[#allocation4 + $0xa4] sm:$0xf]  ;;  %v939_v28 = vld [vmem:[#allocation4 + $0xb0] sm:$0xf0]  ;;  %v945_v29 = vld [vmem:[#allocation4 + $0xa8] sm:$0xf]  ;;  %v938_v30 = vor.u32 %v1170_v25, %v937_v24 }
  0x1d   : > { %457 = vmatpush.bf16.msra.mxu0 %v954_v17  ;;  %v1171_v31 = vld [vmem:[#allocation4 + $0xb4] sm:$0xf0]  ;;  %v1169_v32 = vld [vmem:[#allocation4 + $0xac] sm:$0xf]  ;;  %v947_v33 = vld [vmem:[#allocation4 + $0xb8] sm:$0xf0]  ;;  %v942_v34 = vor.u32 %v1168_v27, %v939_v28 }
  0x1e   : > { %470 = vmatpush.bf16.msra.mxu1 %v958_v18  ;;  %483 = vmatpush.bf16.msra.mxu2 %v962_v22  ;;  %v946_v35 = vor.u32 %v1171_v31, %v945_v29  ;;  %v921_v36 = vld [vmem:[#allocation4 + $0x80] sm:$0xf]  ;;  %v1166_v37 = vld [vmem:[#allocation4 + $0x8c] sm:$0xf0]  ;;  %v1164_v38 = vld [vmem:[#allocation4 + $0x84] sm:$0xf]  ;;  %v950_v39 = vor.u32 %v1169_v32, %v947_v33 }
  0x1f   : > { %496 = vmatpush.bf16.msra.mxu3 %v966_v26  ;;  %v923_v40 = vld [vmem:[#allocation4 + $0x90] sm:$0xf0]  ;;  %v929_v41 = vld [vmem:[#allocation4 + $0x88] sm:$0xf]  ;;  %v1167_v42 = vld [vmem:[#allocation4 + $0x94] sm:$0xf0]  ;;  %v922_v45 = vor.u32 %v1166_v37, %v921_v36 }
  0x20   : > { %v1165_v43 = vld [vmem:[#allocation4 + $0x8c] sm:$0xf]  ;;  %v931_v44 = vld [vmem:[#allocation4 + $0x98] sm:$0xf0]  ;;  %v926_v46 = vor.u32 %v1164_v38, %v923_v40  ;;  %v930_v47 = vor.u32 %v1167_v42, %v929_v41  ;;  %v905_v48 = vld [vmem:[#allocation4 + $0x60] sm:$0xf] }
  0x21   : > { %458 = vmatpush.bf16.msra.mxu0 %v938_v30  ;;  %v1162_v49 = vld [vmem:[#allocation4 + $0x6c] sm:$0xf0]  ;;  %v1160_v50 = vld [vmem:[#allocation4 + $0x64] sm:$0xf]  ;;  %v934_v51 = vor.u32 %v1165_v43, %v931_v44  ;;  %v907_v52 = vld [vmem:[#allocation4 + $0x70] sm:$0xf0] }
  0x22   : > { %471 = vmatpush.bf16.msra.mxu1 %v942_v34  ;;  %484 = vmatpush.bf16.msra.mxu2 %v946_v35  ;;  %v913_v53 = vld [vmem:[#allocation4 + $0x68] sm:$0xf]  ;;  %v1163_v54 = vld [vmem:[#allocation4 + $0x74] sm:$0xf0]  ;;  %v1161_v55 = vld [vmem:[#allocation4 + $0x6c] sm:$0xf]  ;;  %v906_v57 = vor.u32 %v1162_v49, %v905_v48  ;;  %v910_v58 = vor.u32 %v1160_v50, %v907_v52 }
  0x23   : > { %497 = vmatpush.bf16.msra.mxu3 %v950_v39  ;;  %v915_v56 = vld [vmem:[#allocation4 + $0x78] sm:$0xf0]  ;;  %v914_v59 = vor.u32 %v1163_v54, %v913_v53  ;;  %v889_v60 = vld [vmem:[#allocation4 + $0x40] sm:$0xf]  ;;  %v1158_v61 = vld [vmem:[#allocation4 + $0x4c] sm:$0xf0] }
  0x24   : > { %v1156_v62 = vld [vmem:[#allocation4 + $0x44] sm:$0xf]  ;;  %v918_v63 = vor.u32 %v1161_v55, %v915_v56  ;;  %v891_v0 = vld [vmem:[#allocation4 + $0x50] sm:$0xf0]  ;;  %v897_v1 = vld [vmem:[#allocation4 + $0x48] sm:$0xf]  ;;  %v890_v5 = vor.u32 %v1158_v61, %v889_v60 }
  0x25   : > { %459 = vmatpush.bf16.msra.mxu0 %v922_v45  ;;  %v1159_v2 = vld [vmem:[#allocation4 + $0x54] sm:$0xf0]  ;;  %v1157_v3 = vld [vmem:[#allocation4 + $0x4c] sm:$0xf]  ;;  %v899_v4 = vld [vmem:[#allocation4 + $0x58] sm:$0xf0]  ;;  %v894_v6 = vor.u32 %v1156_v62, %v891_v0 }
  0x26   : > { %472 = vmatpush.bf16.msra.mxu1 %v926_v46  ;;  %485 = vmatpush.bf16.msra.mxu2 %v930_v47  ;;  %v898_v7 = vor.u32 %v1159_v2, %v897_v1  ;;  %v873_v8 = vld [vmem:[#allocation4 + $0x20] sm:$0xf]  ;;  %v1154_v9 = vld [vmem:[#allocation4 + $0x2c] sm:$0xf0]  ;;  %v1152_v10 = vld [vmem:[#allocation4 + $0x24] sm:$0xf]  ;;  %v902_v11 = vor.u32 %v1157_v3, %v899_v4 }
  0x27   : > { %498 = vmatpush.bf16.msra.mxu3 %v934_v51  ;;  %v875_v12 = vld [vmem:[#allocation4 + $0x30] sm:$0xf0]  ;;  %v881_v13 = vld [vmem:[#allocation4 + $0x28] sm:$0xf]  ;;  %v1155_v14 = vld [vmem:[#allocation4 + $0x34] sm:$0xf0]  ;;  %v874_v17 = vor.u32 %v1154_v9, %v873_v8 }
  0x28   : > { %v1153_v15 = vld [vmem:[#allocation4 + $0x2c] sm:$0xf]  ;;  %v883_v16 = vld [vmem:[#allocation4 + $0x38] sm:$0xf0]  ;;  %v857_v18 = vld [vmem:[#allocation4] sm:$0xf]  ;;  %v878_v20 = vor.u32 %v1152_v10, %v875_v12  ;;  %v882_v21 = vor.u32 %v1155_v14, %v881_v13 }
  0x29   : > { %460 = vmatpush.bf16.msra.mxu0 %v906_v57  ;;  %v1150_v19 = vld [vmem:[#allocation4 + $0xc] sm:$0xf0]  ;;  %v1148_v22 = vld [vmem:[#allocation4 + $0x4] sm:$0xf]  ;;  %v859_v23 = vld [vmem:[#allocation4 + $0x10] sm:$0xf0]  ;;  %v886_v25 = vor.u32 %v1153_v15, %v883_v16 }
  0x2a   : > { %473 = vmatpush.bf16.msra.mxu1 %v910_v58  ;;  %486 = vmatpush.bf16.msra.mxu2 %v914_v59  ;;  %v865_v24 = vld [vmem:[#allocation4 + $0x8] sm:$0xf]  ;;  %v1151_v26 = vld [vmem:[#allocation4 + $0x14] sm:$0xf0]  ;;  %v1149_v27 = vld [vmem:[#allocation4 + $0xc] sm:$0xf]  ;;  %v858_v32 = vor.u32 %v1150_v19, %v857_v18  ;;  %v862_v36 = vor.u32 %v1148_v22, %v859_v23 }
  0x2b   : > { %499 = vmatpush.bf16.msra.mxu3 %v918_v63  ;;  %v867_v28 = vld [vmem:[#allocation4 + $0x18] sm:$0xf0]  ;;  %v1097_v29 = vld [vmem:[%s1517_s1 + $0xe0] sm:$0xf]  ;;  %v1146_v30 = vld [vmem:[%s1517_s1 + $0xec] sm:$0xf0]  ;;  %v866_v37 = vor.u32 %v1151_v26, %v865_v24 }
  0x2c   : > { %v1144_v31 = vld [vmem:[%s1517_s1 + $0xe4] sm:$0xf]  ;;  %v1099_v33 = vld [vmem:[%s1517_s1 + $0xf0] sm:$0xf0]  ;;  %v1105_v34 = vld [vmem:[%s1517_s1 + $0xe8] sm:$0xf]  ;;  %v870_v41 = vor.u32 %v1149_v27, %v867_v28  ;;  %v1098_v42 = vor.u32 %v1146_v30, %v1097_v29 }
  0x2d   : > { %461 = vmatpush.bf16.msra.mxu0 %v890_v5  ;;  %v1147_v35 = vld [vmem:[%s1517_s1 + $0xf4] sm:$0xf0]  ;;  %v1145_v38 = vld [vmem:[%s1517_s1 + $0xec] sm:$0xf]  ;;  %v1107_v39 = vld [vmem:[%s1517_s1 + $0xf8] sm:$0xf0]  ;;  %v1102_v43 = vor.u32 %v1144_v31, %v1099_v33 }
  0x2e   : > { %474 = vmatpush.bf16.msra.mxu1 %v894_v6  ;;  %487 = vmatpush.bf16.msra.mxu2 %v898_v7  ;;  %v229_v40 = vld [vmem:[#allocation2] sm:$0xff]  ;;  %v1106_v44 = vor.u32 %v1147_v35, %v1105_v34  ;;  %v1142_v46 = vld [vmem:[%s1517_s1 + $0xcc] sm:$0xf0]  ;;  %v1110_v48 = vor.u32 %v1145_v38, %v1107_v39  ;;  %v1083_v49 = vld [vmem:[%s1517_s1 + $0xd0] sm:$0xf0] }
  0x2f   : > { %500 = vmatpush.bf16.msra.mxu3 %v902_v11  ;;  %v1081_v45 = vld [vmem:[%s1517_s1 + $0xc0] sm:$0xf]  ;;  %v1140_v47 = vld [vmem:[%s1517_s1 + $0xc4] sm:$0xf]  ;;  %v1089_v50 = vld [vmem:[%s1517_s1 + $0xc8] sm:$0xf]  ;;  %v263_v52 = vpack.c.bf16 %v229_v40, %v229_v40 }
  0x30   : > { %v1143_v51 = vld [vmem:[%s1517_s1 + $0xd4] sm:$0xf0]  ;;  %v1141_v53 = vld [vmem:[%s1517_s1 + $0xcc] sm:$0xf]  ;;  %v1091_v54 = vld [vmem:[%s1517_s1 + $0xd8] sm:$0xf0]  ;;  %v1082_v55 = vor.u32 %v1142_v46, %v1081_v45  ;;  %v1086_v56 = vor.u32 %v1140_v47, %v1083_v49 }
  0x31   : > { %462 = vmatpush.bf16.msra.mxu0 %v874_v17  ;;  %v1090_v57 = vor.u32 %v1143_v51, %v1089_v50  ;;  %v1065_v58 = vld [vmem:[%s1517_s1 + $0xa0] sm:$0xf]  ;;  %v1138_v59 = vld [vmem:[%s1517_s1 + $0xac] sm:$0xf0]  ;;  %v1136_v60 = vld [vmem:[%s1517_s1 + $0xa4] sm:$0xf]  ;;  %v1094_v61 = vor.u32 %v1141_v53, %v1091_v54 }
  0x32   : > { %475 = vmatpush.bf16.msra.mxu1 %v878_v20  ;;  %488 = vmatpush.bf16.msra.mxu2 %v882_v21  ;;  %v1067_v62 = vld [vmem:[%s1517_s1 + $0xb0] sm:$0xf0]  ;;  %v1073_v63 = vld [vmem:[%s1517_s1 + $0xa8] sm:$0xf]  ;;  %v1139_v0 = vld [vmem:[%s1517_s1 + $0xb4] sm:$0xf0]  ;;  %v1066_v3 = vor.u32 %v1138_v59, %v1065_v58 }
  0x33   : > { %501 = vmatpush.bf16.msra.mxu3 %v886_v25  ;;  %v1137_v1 = vld [vmem:[%s1517_s1 + $0xac] sm:$0xf]  ;;  %v1075_v2 = vld [vmem:[%s1517_s1 + $0xb8] sm:$0xf0]  ;;  %v1070_v4 = vor.u32 %v1136_v60, %v1067_v62  ;;  %v1074_v5 = vor.u32 %v1139_v0, %v1073_v63  ;;  %v1049_v6 = vld [vmem:[%s1517_s1 + $0x80] sm:$0xf] }
  0x34   : > { %v1134_v7 = vld [vmem:[%s1517_s1 + $0x8c] sm:$0xf0]  ;;  %v1132_v8 = vld [vmem:[%s1517_s1 + $0x84] sm:$0xf]  ;;  %v1078_v9 = vor.u32 %v1137_v1, %v1075_v2  ;;  %v1051_v10 = vld [vmem:[%s1517_s1 + $0x90] sm:$0xf0] }
  0x35   : > { %463 = vmatpush.bf16.msra.mxu0 %v858_v32  ;;  %v1057_v11 = vld [vmem:[%s1517_s1 + $0x88] sm:$0xf]  ;;  %v1135_v12 = vld [vmem:[%s1517_s1 + $0x94] sm:$0xf0]  ;;  %v1133_v13 = vld [vmem:[%s1517_s1 + $0x8c] sm:$0xf]  ;;  %v1050_v15 = vor.u32 %v1134_v7, %v1049_v6  ;;  %v1054_v16 = vor.u32 %v1132_v8, %v1051_v10 }
  0x36   : > { %476 = vmatpush.bf16.msra.mxu1 %v862_v36  ;;  %489 = vmatpush.bf16.msra.mxu2 %v866_v37  ;;  %v1059_v14 = vld [vmem:[%s1517_s1 + $0x98] sm:$0xf0]  ;;  %v1058_v17 = vor.u32 %v1135_v12, %v1057_v11  ;;  %v1033_v18 = vld [vmem:[%s1517_s1 + $0x60] sm:$0xf]  ;;  %v1130_v19 = vld [vmem:[%s1517_s1 + $0x6c] sm:$0xf0] }
  0x37   : > { %502 = vmatpush.bf16.msra.mxu3 %v870_v41  ;;  %v1128_v20 = vld [vmem:[%s1517_s1 + $0x64] sm:$0xf]  ;;  %v1062_v21 = vor.u32 %v1133_v13, %v1059_v14  ;;  %v1035_v22 = vld [vmem:[%s1517_s1 + $0x70] sm:$0xf0]  ;;  %v1041_v23 = vld [vmem:[%s1517_s1 + $0x68] sm:$0xf]  ;;  %v1034_v27 = vor.u32 %v1130_v19, %v1033_v18 }
  0x38   : > { %464 = vmatmul.bf16.vlgmr.msra.gmra.mxu0 %v263_v52  ;;  %v1131_v24 = vld [vmem:[%s1517_s1 + $0x74] sm:$0xf0]  ;;  %v1129_v25 = vld [vmem:[%s1517_s1 + $0x6c] sm:$0xf]  ;;  %v1043_v26 = vld [vmem:[%s1517_s1 + $0x78] sm:$0xf0]  ;;  %v1038_v28 = vor.u32 %v1128_v20, %v1035_v22 }
  0x39   : > { %668 = vmatpush.bf16.msrb.mxu0 %v1098_v42  ;;  %477 = vmatmul.bf16.vlgmr.msra.gmra.mxu1 %v263_v52  ;;  %v1042_v29 = vor.u32 %v1131_v24, %v1041_v23  ;;  %v1017_v30 = vld [vmem:[%s1517_s1 + $0x40] sm:$0xf]  ;;  %v1126_v31 = vld [vmem:[%s1517_s1 + $0x4c] sm:$0xf0]  ;;  %v1124_v32 = vld [vmem:[%s1517_s1 + $0x44] sm:$0xf]  ;;  %v1046_v33 = vor.u32 %v1129_v25, %v1043_v26 }
  0x3a   : > { %681 = vmatpush.bf16.msrb.mxu1 %v1102_v43  ;;  %694 = vmatpush.bf16.msrb.mxu2 %v1106_v44  ;;  %v1019_v34 = vld [vmem:[%s1517_s1 + $0x50] sm:$0xf0]  ;;  %v1025_v35 = vld [vmem:[%s1517_s1 + $0x48] sm:$0xf]  ;;  %v1127_v36 = vld [vmem:[%s1517_s1 + $0x54] sm:$0xf0]  ;;  %v1018_v39 = vor.u32 %v1126_v31, %v1017_v30 }
  0x3b   : > { %707 = vmatpush.bf16.msrb.mxu3 %v1110_v48  ;;  %490 = vmatmul.bf16.vlgmr.msra.gmra.mxu2 %v263_v52  ;;  %v1125_v37 = vld [vmem:[%s1517_s1 + $0x4c] sm:$0xf]  ;;  %v1027_v38 = vld [vmem:[%s1517_s1 + $0x58] sm:$0xf0]  ;;  %v1022_v40 = vor.u32 %v1124_v32, %v1019_v34  ;;  %v1026_v41 = vor.u32 %v1127_v36, %v1025_v35  ;;  %v1001_v42 = vld [vmem:[%s1517_s1 + $0x20] sm:$0xf] }
  0x3c   : > { %503 = vmatmul.bf16.vlgmr.msra.gmra.mxu3 %v263_v52  ;;  %v1122_v43 = vld [vmem:[%s1517_s1 + $0x2c] sm:$0xf0]  ;;  %v1120_v44 = vld [vmem:[%s1517_s1 + $0x24] sm:$0xf]  ;;  %v1030_v45 = vor.u32 %v1125_v37, %v1027_v38  ;;  %v1003_v46 = vld [vmem:[%s1517_s1 + $0x30] sm:$0xf0] }
  0x3d   : > { %669 = vmatpush.bf16.msrb.mxu0 %v1082_v55  ;;  %v1009_v47 = vld [vmem:[%s1517_s1 + $0x28] sm:$0xf]  ;;  %v1123_v48 = vld [vmem:[%s1517_s1 + $0x34] sm:$0xf0]  ;;  %v1121_v49 = vld [vmem:[%s1517_s1 + $0x2c] sm:$0xf]  ;;  %v1002_v51 = vor.u32 %v1122_v43, %v1001_v42  ;;  %v1006_v52 = vor.u32 %v1120_v44, %v1003_v46 }
  0x3e   : > { %682 = vmatpush.bf16.msrb.mxu1 %v1086_v56  ;;  %695 = vmatpush.bf16.msrb.mxu2 %v1090_v57  ;;  %v1011_v50 = vld [vmem:[%s1517_s1 + $0x38] sm:$0xf0]  ;;  %v1010_v53 = vor.u32 %v1123_v48, %v1009_v47  ;;  %v985_v54 = vld [vmem:[%s1517_s1] sm:$0xf]  ;;  %v1118_v55 = vld [vmem:[%s1517_s1 + $0xc] sm:$0xf0] }
  0x3f   : > { %708 = vmatpush.bf16.msrb.mxu3 %v1094_v61  ;;  %v1116_v56 = vld [vmem:[%s1517_s1 + $0x4] sm:$0xf]  ;;  %v1014_v57 = vor.u32 %v1121_v49, %v1011_v50  ;;  %v987_v58 = vld [vmem:[%s1517_s1 + $0x10] sm:$0xf0]  ;;  %v993_v59 = vld [vmem:[%s1517_s1 + $0x8] sm:$0xf]  ;;  %v986_v63 = vor.u32 %v1118_v55, %v985_v54 }
  0x40   : > { %v1119_v60 = vld [vmem:[%s1517_s1 + $0x14] sm:$0xf0]  ;;  %v1117_v61 = vld [vmem:[%s1517_s1 + $0xc] sm:$0xf]  ;;  %v995_v62 = vld [vmem:[%s1517_s1 + $0x18] sm:$0xf0]  ;;  %v990_v0 = vor.u32 %v1116_v56, %v987_v58 }
  0x41   : > { %670 = vmatpush.bf16.msrb.mxu0 %v1066_v3  ;;  %v994_v1 = vor.u32 %v1119_v60, %v993_v59  ;;  %v998_v2 = vor.u32 %v1117_v61, %v995_v62  ;;  %v228_v3 = vld [vmem:[%s1308_s6] sm:$0xf]  ;;  %v230_v59 = vld [vmem:[#allocation3] sm:$0xff] }
  0x42   : > { %683 = vmatpush.bf16.msrb.mxu1 %v1070_v4  ;;  %696 = vmatpush.bf16.msrb.mxu2 %v1074_v5  ;;  %v720_v12 = vld [vmem:[%s1519_s3] sm:$0xf] }
  0x43   : > { %709 = vmatpush.bf16.msrb.mxu3 %v1078_v9  ;;  %v722_v13 = vperm.slane %v720_v12, 0  ;;  %v725_v24 = vperm.slane %v720_v12, 3  ;;  %v724_v38 = vperm.slane %v720_v12, 2 }
  0x45   : > { %671 = vmatpush.bf16.msrb.mxu0 %v1050_v15  ;;  %v723_v15 = vperm.slane %v720_v12, 1 }
  0x46   : > { %684 = vmatpush.bf16.msrb.mxu1 %v1054_v16  ;;  %697 = vmatpush.bf16.msrb.mxu2 %v1058_v17 }
  0x47   : > { %710 = vmatpush.bf16.msrb.mxu3 %v1062_v21 }
  0x49   : > { %672 = vmatpush.bf16.msrb.mxu0 %v1034_v27 }
  0x4a   : > { %685 = vmatpush.bf16.msrb.mxu1 %v1038_v28  ;;  %698 = vmatpush.bf16.msrb.mxu2 %v1042_v29 }
  0x4b   : > { %711 = vmatpush.bf16.msrb.mxu3 %v1046_v33 }
  0x4d   : > { %673 = vmatpush.bf16.msrb.mxu0 %v1018_v39 }
  0x4e   : > { %686 = vmatpush.bf16.msrb.mxu1 %v1022_v40  ;;  %699 = vmatpush.bf16.msrb.mxu2 %v1026_v41 }
  0x4f   : > { %712 = vmatpush.bf16.msrb.mxu3 %v1030_v45 }
  0x51   : > { %674 = vmatpush.bf16.msrb.mxu0 %v1002_v51 }
  0x52   : > { %687 = vmatpush.bf16.msrb.mxu1 %v1006_v52  ;;  %700 = vmatpush.bf16.msrb.mxu2 %v1010_v53 }
  0x53   : > { %713 = vmatpush.bf16.msrb.mxu3 %v1014_v57 }
  0x55   : > { %675 = vmatpush.bf16.msrb.mxu0 %v986_v63 }
  0x56   : > { %688 = vmatpush.bf16.msrb.mxu1 %v990_v0  ;;  %701 = vmatpush.bf16.msrb.mxu2 %v994_v1 }
  0x57   : > { %714 = vmatpush.bf16.msrb.mxu3 %v998_v2 }
  0x58   : > { %676 = vmatmul.bf16.vlgmr.msrb.gmra.mxu0 %v228_v3 }
  0x59   : > { %689 = vmatmul.bf16.vlgmr.msrb.gmra.mxu1 %v228_v3  ;;  %702 = vmatmul.bf16.vlgmr.msrb.gmra.mxu2 %v228_v3 }
  0x5a   : > { %715 = vmatmul.bf16.vlgmr.msrb.gmra.mxu3 %v228_v3 }
  0xb5   : > { %v465_v4 = vpop.f32.mrf.mxu0 }
  0xb6   : > { %v478_v5 = vpop.f32.mrf.mxu1 }
  0xbd   : > { %v467_v7 = vpop.f32.mrf.mxu0 }
  0xbe   : > { %v491_v8 = vpop.f32.mrf.mxu2  ;;  %v480_v9 = vpop.f32.mrf.mxu1 }
  0xbf   : > { %v504_v6 = vpop.f32.mrf.mxu3 }
  0xc6   : > { %v493_v11 = vpop.f32.mrf.mxu2 }
  0xc7   : > { %v506_v10 = vpop.f32.mrf.mxu3 }
  0xd5   : > { %v677_v14 = vpop.f32.mrf.mxu0 }
  0xd6   : > { %v678_v16 = vadd.f32 %v677_v14, %v465_v4  ;;  %v690_v17 = vpop.f32.mrf.mxu1 }
  0xd7   : > { %v691_v18 = vadd.f32 %v690_v17, %v478_v5 }
  0xd8   : > { %v730_v19 = vadd.f32 %v722_v13, %v678_v16 }
  0xd9   : > { %v731_v20 = vadd.f32 %v723_v15, %v691_v18 }
  0xda   : > { %v1111_v21 = vmul.f32 -1.442695, %v730_v19 }
  0xdb   : > { %v1112_v22 = vmul.f32 -1.442695, %v731_v20 }
  0xdc   : > { %1202 = vpow2.f32 %v1111_v21  ;;  %v703_v23 = vpop.f32.mrf.mxu2 }
  0xdd   : > { %1204 = vpow2.f32 %v1112_v22  ;;  %v716_v25 = vpop.f32.mrf.mxu3  ;;  %v679_v26 = vpop.f32.mrf.mxu0  ;;  %v704_v37 = vadd.f32 %v703_v23, %v491_v8 }
  0xde   : > { %v717_v27 = vadd.f32 %v716_v25, %v504_v6  ;;  %v692_v28 = vpop.f32.mrf.mxu1 }
  0xdf   : > { %v732_v41 = vadd.f32 %v724_v38, %v704_v37 }
  0xe0   : > { %v733_v29 = vadd.f32 %v725_v24, %v717_v27 }
  0xe2   : > { %v1203_v30 = vpop.eup %1202  ;;  %v1113_v31 = vmul.f32 -1.442695, %v733_v29 }
  0xe3   : > { %v1205_v32 = vpop.eup %1204  ;;  %v737_v33 = vadd.f32 1.0, %v1203_v30 }
  0xe4   : > { %v756_v34 = vadd.f32 1.0, %v1205_v32  ;;  %1206 = vpow2.f32 %v1113_v31  ;;  %v705_v35 = vpop.f32.mrf.mxu2 }
  0xe5   : > { %1208 = vrcp.f32 %v737_v33  ;;  %v718_v36 = vpop.f32.mrf.mxu3  ;;  %v749_v48 = vand.u32 2147483648, %v737_v33  ;;  %v747_v51 = vand.u32 2147483647, %v737_v33  ;;  %vm743_vm2 = vweird.f32 %v737_v33 }
  0xe6   : > { %1210 = vrcp.f32 %v756_v34  ;;  %v768_v49 = vand.u32 2147483648, %v756_v34  ;;  %v766_v53 = vand.u32 2147483647, %v756_v34  ;;  %vm762_vm3 = vweird.f32 %v756_v34 }
  0xe7   : > { %v750_v56 = vor.u32 1.1754944e-38, %v749_v48  ;;  %vm748_vm6 = vcmp.eq.f32.partialorder %v747_v51, 8.507059e+37 }
  0xe8   : > { %v769_v58 = vor.u32 1.1754944e-38, %v768_v49  ;;  %vm767_vm7 = vcmp.eq.f32.partialorder %v766_v53, 8.507059e+37 }
  0xea   : > { %v1207_v39 = vpop.eup %1206 }
  0xeb   : > { %v1209_v40 = vpop.eup %1208  ;;  %v776_v42 = vadd.f32 1.0, %v1207_v39 }
  0xec   : > { %v1211_v43 = vpop.eup %1210  ;;  %v739_v44 = vmul.f32 %v1209_v40, %v737_v33  ;;  %vm744_vm0 = vweird.f32 %v1209_v40 }
  0xed   : > { %v758_v45 = vmul.f32 %v1211_v43, %v756_v34  ;;  %1212 = vrcp.f32 %v776_v42  ;;  %vm763_vm1 = vweird.f32 %v1211_v43  ;;  %vm745_vm4 = vmor %vm743_vm2, %vm744_vm0  ;;  %v788_v8 = vand.u32 2147483648, %v776_v42 }
  0xee   : > { %v740_v46 = vsub.f32 1.0, %v739_v44  ;;  %1214 = vtanh.f32 %v732_v41  ;;  %vm764_vm5 = vmor %vm762_vm3, %vm763_vm1  ;;  %vm782_vm9 = vweird.f32 %v776_v42  ;;  %v786_v9 = vand.u32 2147483647, %v776_v42 }
  0xef   : > { %v759_v47 = vsub.f32 1.0, %v758_v45  ;;  %v789_v11 = vor.u32 1.1754944e-38, %v788_v8 }
  0xf0   : > { %v741_v50 = vmul.f32 %v1209_v40, %v740_v46  ;;  %vm787_vm11 = vcmp.eq.f32.partialorder %v786_v9, 8.507059e+37 }
  0xf1   : > { %v760_v52 = vmul.f32 %v1211_v43, %v759_v47 }
  0xf2   : > { %v742_v54 = vadd.f32 %v1209_v40, %v741_v50 }
  0xf3   : > { %v1213_v55 = vpop.eup %1212  ;;  %v761_v57 = vadd.f32 %v1211_v43, %v760_v52 }
  0xf4   : > { %v746_v60 = vsel %vm745_vm4, %v1209_v40, %v742_v54  ;;  %v778_v61 = vmul.f32 %v1213_v55, %v776_v42  ;;  %v1215_v62 = vpop.eup %1214  ;;  %vm783_vm8 = vweird.f32 %v1213_v55 }
  0xf5   : > { %v751_v63 = vsel %vm748_vm6, %v750_v56, %v746_v60  ;;  %v765_v0 = vsel %vm764_vm5, %v1211_v43, %v761_v57  ;;  %vm784_vm10 = vmor %vm782_vm9, %vm783_vm8 }
  0xf6   : > { %v770_v1 = vsel %vm767_vm7, %v769_v58, %v765_v0  ;;  %v793_v2 = vmul.f32 %v1215_v62, %v751_v63  ;;  %v779_v3 = vsub.f32 1.0, %v778_v61 }
  0xf7   : > { %v792_v4 = vmul.f32 %v770_v1, %v230_v59 }
  0xf8   : > { %v780_v5 = vmul.f32 %v1213_v55, %v779_v3 }
  0xf9   : > { %v794_v6 = vadd.f32 %v793_v2, %v792_v4 }
  0xfa   : > { %v781_v7 = vadd.f32 %v1213_v55, %v780_v5 }
  0xfb   : > { %1216 = vtanh.f32 %v794_v6  ;;  %798 = vst [vmem:[#allocation3] sm:$0xff] %v794_v6 }
  0xfc   : > { %800 = vst [vmem:[%s1521_s5] sm:$0xff] %v794_v6  ;;  %v785_v10 = vsel %vm784_vm10, %v1213_v55, %v781_v7 }
  0xfd   : > { %v790_v13 = vsel %vm787_vm11, %v789_v11, %v785_v10 }
 0x101   : > { %v1217_v12 = vpop.eup %1216 }
 0x102   : > { %v796_v14 = vmul.f32 %v1217_v12, %v790_v13 }
 0x104   : > { %797 = vst [vmem:[#allocation2] sm:$0xff] %v796_v14 }
 0x105   : > { %799 = vst [vmem:[%s1520_s4] sm:$0xff] %v796_v14 }
 0x106 PF: > { %s17_s18 = sadd.s32 1, %s1258_s18  }
 0x107   : > { %p14_p8 = scmp.ge.s32.totalorder %s17_s18, 10  }
 0x109   :  { %16 = sbr.rel (!%p14_p8) target bundleno = 1 (0x1), region = 79 }
 0x10e   :  { %818 = vsyncpa [#allocation5], 1 }
 0x10f   :  { %820 = vsyncpa [#allocation5 + $0x1], 1 }

</bundles_post_ra>
